<compile_context>
chip_gen: v7x
topology: tpu7x:2x2x1
jax: 0.10.0
libtpu: 0.0.40
codegen_flags: <defaults>
</compile_context>

<pallas_src>
import functools
import math

import jax
import jax.numpy as jnp
from jax import lax
from jax.experimental import pallas as pl
from jax.experimental.pallas import tpu as pltpu


def _ecsa_kernel(x_ref, wqkv_ref, bqkv_ref, wproj_ref, bproj_ref, scale_ref,
                 o_ref, *, head_dim):
    Bt, N, Cp = x_ref.shape
    f32 = jnp.float32

    # ---- fused qkv projection: bf16 operands, f32 accumulation (MXU) ----
    xb = x_ref[...].astype(jnp.bfloat16)
    qkv = lax.dot_general(xb, wqkv_ref[...], (((2,), (0,)), ((), ())),
                          preferred_element_type=f32)
    qkv = qkv + bqkv_ref[...]                       # (Bt, N, 3*Cp) f32
    q = qkv[:, :, :Cp]
    k = qkv[:, :, Cp:2 * Cp]
    v = qkv[:, :, 2 * Cp:]

    # ---- F.normalize(dim=-2) over tokens; EUP rsqrt; PyTorch eps semantics ----
    # max(sqrt(ss), 1e-12) then divide  ==  multiply by rsqrt(max(ss, 1e-24)).
    eps2 = f32(1e-24)
    qn = q * lax.rsqrt(jnp.maximum(jnp.sum(q * q, axis=1, keepdims=True), eps2))
    kn = k * lax.rsqrt(jnp.maximum(jnp.sum(k * k, axis=1, keepdims=True), eps2))
    # Fold exp(clamped logit_scale) (per q-channel row vector) into q columns.
    qn = qn * scale_ref[...]

    # ---- all-head channel-channel attention logits (contract tokens, f32) ----
    a = lax.dot_general(qn, kn, (((1,), (1,)), ((0,), (0,))),
                        preferred_element_type=f32)          # (Bt, Cp, Cp)

    # ---- block-diagonal head mask generated in-kernel (no HBM operand) ----
    ri = lax.broadcasted_iota(jnp.int32, (Cp, Cp), 0)
    ci = lax.broadcasted_iota(jnp.int32, (Cp, Cp), 1)
    if head_dim & (head_dim - 1) == 0:          # power of two -> cheap shifts
        s = head_dim.bit_length() - 1
        same_head = (ri >> s) == (ci >> s)
    else:
        same_head = (ri // head_dim) == (ci // head_dim)
    a = a + jnp.where(same_head, f32(0.0), f32(-1e30))

    # ---- row softmax: shift by rowmax (logits can reach ~100), EUP recip ----
    a = a - jnp.max(a, axis=-1, keepdims=True)
    p = jnp.exp(a)
    p = p * pl.reciprocal(jnp.sum(p, axis=-1, keepdims=True), approx=True)

    # ---- per-head (attn @ v^T)^T for all heads at once: contract channels ----
    y = lax.dot_general(v.astype(jnp.bfloat16), p.astype(jnp.bfloat16),
                        (((2,), (2,)), ((0,), (0,))),
                        preferred_element_type=f32)          # (Bt, N, Cp)

    # ---- output projection, written straight to o_ref ----
    out = lax.dot_general(y.astype(jnp.bfloat16), wproj_ref[...],
                          (((2,), (0,)), ((), ())),
                          preferred_element_type=f32)
    o_ref[...] = (out + bproj_ref[...]).astype(o_ref.dtype)


def _round_up(x, m):
    return (x + m - 1) // m * m


def _vmem_bytes_estimate(bt, n, cp, in_bytes, out_bytes):
    """Rough per-grid-step VMEM footprint for the kernel above."""
    rows = bt * n
    est = 2 * rows * cp * in_bytes          # x block, double-buffered
    est += 2 * rows * cp * out_bytes        # out block, double-buffered
    est += cp * 3 * cp * 2 + cp * cp * 2    # bf16 weight slabs (single-buffered)
    est += (3 * cp + cp + cp) * 4           # biases + scale row (f32)
    est += rows * 3 * cp * 4                # qkv slab (f32)
    est += 4 * rows * cp * 4                # qn/kn working copies, y, out
    est += 3 * bt * cp * cp * 4             # logits / probs / mask
    return est


def _pick_batch_tile(B, N, Cp, in_bytes, out_bytes,
                     vmem_budget=40 * 1024 * 1024, max_rows=2048):
    """Largest divisor Bt of B fitting the VMEM budget, keeping >= 2 grid steps
    (pipelining / v7x's two TensorCores) whenever B allows it."""
    best = 1
    for bt in range(1, B + 1):
        if B % bt:
            continue
        if bt * N > max_rows:
            continue
        if B >= 2 and B // bt < 2:
            continue
        if _vmem_bytes_estimate(bt, N, Cp, in_bytes, out_bytes) > vmem_budget:
            continue
        best = bt
    return best


def ecsa_forward(x, w_qkv, b_qkv, w_proj, b_proj, logit_scale, num_heads,
                 batch_tile=None):
    B, N, C = x.shape
    d = C // num_heads
    Cp = _round_up(C, 128)          # lane-dense padded channel count
    f32 = jnp.float32

    in_bytes = jnp.dtype(x.dtype).itemsize
    Bt = (_pick_batch_tile(B, N, Cp, in_bytes, in_bytes)
          if batch_tile is None else batch_tile)
    assert B % Bt == 0

    # ---- host-side packing: (out,in) -> (in,out), zero-pad channels, bf16 ----
    w_qkv = jnp.asarray(w_qkv)          # (3C, C)
    w_proj = jnp.asarray(w_proj)        # (C, C)
    wq, wk, wv = w_qkv[:C], w_qkv[C:2 * C], w_qkv[2 * C:]

    wqkv_p = jnp.zeros((Cp, 3 * Cp), f32)
    wqkv_p = wqkv_p.at[:C, 0:C].set(wq.T.astype(f32))
    wqkv_p = wqkv_p.at[:C, Cp:Cp + C].set(wk.T.astype(f32))
    wqkv_p = wqkv_p.at[:C, 2 * Cp:2 * Cp + C].set(wv.T.astype(f32))
    wqkv_p = wqkv_p.astype(jnp.bfloat16)

    wproj_p = jnp.zeros((Cp, Cp), f32).at[:C, :C].set(w_proj.T.astype(f32))
    wproj_p = wproj_p.astype(jnp.bfloat16)

    b_qkv = jnp.asarray(b_qkv).astype(f32)
    bq, bk, bv = b_qkv[:C], b_qkv[C:2 * C], b_qkv[2 * C:]
    bqkv_p = jnp.zeros((1, 3 * Cp), f32)
    bqkv_p = bqkv_p.at[0, 0:C].set(bq).at[0, Cp:Cp + C].set(bk)
    bqkv_p = bqkv_p.at[0, 2 * Cp:2 * Cp + C].set(bv)

    bproj_p = jnp.zeros((1, Cp), f32).at[0, :C].set(jnp.asarray(b_proj).astype(f32))

    # exp(clamp(logit_scale, max=log(100))) per head -> per-q-channel row.
    ls = jnp.asarray(logit_scale).reshape(num_heads).astype(f32)
    scale = jnp.exp(jnp.minimum(ls, f32(math.log(1.0 / 0.01))))
    scale_p = jnp.ones((1, Cp), f32).at[0, :C].set(jnp.repeat(scale, d))

    x_p = jnp.pad(x, ((0, 0), (0, 0), (0, Cp - C)))

    est = _vmem_bytes_estimate(Bt, N, Cp, in_bytes, in_bytes)
    vmem_limit = int(min(48 * 1024 * 1024, max(2 * est, 32 * 1024 * 1024)))

    kernel = functools.partial(_ecsa_kernel, head_dim=d)
    grid = (B // Bt,)

    def build(single_buffer_weights):
        def inv_spec(shape):
            idx = (lambda g: (0, 0))
            if single_buffer_weights:
                return pl.BlockSpec(shape, idx, pipeline_mode=pl.Buffered(1))
            return pl.BlockSpec(shape, idx)

        return pl.pallas_call(
            kernel,
            out_shape=jax.ShapeDtypeStruct((B, N, Cp), x.dtype),
            grid_spec=pltpu.PrefetchScalarGridSpec(
                num_scalar_prefetch=0,
                grid=grid,
                in_specs=[
                    pl.BlockSpec((Bt, N, Cp), lambda g: (g, 0, 0)),   # x (padded)
                    inv_spec((Cp, 3 * Cp)),                           # qkv W^T (bf16)
                    inv_spec((1, 3 * Cp)),                            # qkv bias (f32)
                    inv_spec((Cp, Cp)),                               # proj W^T (bf16)
                    inv_spec((1, Cp)),                                # proj bias (f32)
                    inv_spec((1, Cp)),                                # per-channel scale
                ],
                out_specs=pl.BlockSpec((Bt, N, Cp), lambda g: (g, 0, 0)),
            ),
            compiler_params=pltpu.CompilerParams(
                dimension_semantics=("parallel",),
                vmem_limit_bytes=vmem_limit),
        )

    args = (x_p, wqkv_p, bqkv_p, wproj_p, bproj_p, scale_p)
    if hasattr(pl, "Buffered"):
        try:
            out_p = build(True)(*args)
        except Exception:
            # Older jax without BlockSpec pipeline_mode / Buffered(1) support:
            # fall back to default double-buffered invariant operands.
            out_p = build(False)(*args)
    else:
        out_p = build(False)(*args)

    return out_p[:, :, :C]


def ecsa_reference(x, w_qkv, b_qkv, w_proj, b_proj, logit_scale, num_heads):
    """Pure-JAX replica of the PyTorch forward, for verification."""
    B, N, C = x.shape
    d = C // num_heads
    qkv = x @ w_qkv.T + b_qkv
    qkv = qkv.reshape(B, N, 3, num_heads, d).transpose(2, 0, 3, 1, 4)
    q, k, v = qkv[0], qkv[1], qkv[2]                 # (B, H, N, d)

    def _norm(t):
        n = jnp.sqrt(jnp.sum(t * t, axis=-2, keepdims=True))
        return t / jnp.maximum(n, 1e-12)

    attn = jnp.swapaxes(_norm(q), -2, -1) @ _norm(k)          # (B, H, d, d)
    ls = jnp.exp(jnp.minimum(logit_scale, jnp.log(1.0 / 0.01)))
    attn = attn * ls
    attn = jax.nn.softmax(attn, axis=-1)
    out = attn @ jnp.swapaxes(v, -1, -2)                      # (B, H, d, N)
    out = jnp.swapaxes(out, -1, -2)                           # (B, H, N, d)
    out = jnp.swapaxes(out, 1, 2).reshape(B, N, C)
    return out @ w_proj.T + b_proj


if __name__ == "__main__":
    B, N, C, num_heads = 2, 16, 32, 4

    key = jax.random.PRNGKey(0)
    kx, kw1, kb1, kw2, kb2 = jax.random.split(key, 5)

    x = jax.random.normal(kx, (B, N, C), dtype=jnp.float32)
    w_qkv = 0.1 * jax.random.normal(kw1, (3 * C, C), dtype=jnp.float32)   # (out, in)
    b_qkv = 0.1 * jax.random.normal(kb1, (3 * C,), dtype=jnp.float32)     # qkv_bias=True
    w_proj = 0.1 * jax.random.normal(kw2, (C, C), dtype=jnp.float32)
    b_proj = 0.1 * jax.random.normal(kb2, (C,), dtype=jnp.float32)
    logit_scale = jnp.log(10.0) * jnp.ones((num_heads, 1, 1), dtype=jnp.float32)

    out = ecsa_forward(x, w_qkv, b_qkv, w_proj, b_proj, logit_scale, num_heads)
    out = jax.block_until_ready(out)

    ref = ecsa_reference(x, w_qkv, b_qkv, w_proj, b_proj, logit_scale, num_heads)
    assert out.shape == (B, N, C)
    # bf16 MXU operands (per performance review) -> looser parity vs f32 reference.
    assert jnp.allclose(out, ref, atol=3e-2, rtol=3e-2), "mismatch vs reference"

    print("KERNEL_OK")
</pallas_src>

<mosaic_0001>
module attributes {stable_mosaic.version = 11 : i64} {
  func.func @_ecsa_kernel(%arg0: i32, %arg1: memref<1x16x128xf32, #tpu.memory_space<vmem>>, %arg2: memref<128x384xbf16, #tpu.memory_space<vmem>>, %arg3: memref<1x384xf32, #tpu.memory_space<vmem>>, %arg4: memref<128x128xbf16, #tpu.memory_space<vmem>>, %arg5: memref<1x128xf32, #tpu.memory_space<vmem>>, %arg6: memref<1x128xf32, #tpu.memory_space<vmem>>, %arg7: memref<1x16x128xf32, #tpu.memory_space<vmem>>) attributes {dimension_semantics = [#tpu.dimension_semantics<parallel>], iteration_bounds = array<i64: 2>, scalar_prefetch = 0 : i64, scratch_operands = 0 : i64, tpu.core_type = #tpu.core_type<tc>, window_params = [{transform_indices = @transform_0, window_bounds = array<i64: 1, 16, 128>}, {pipeline_mode = #tpu.pipeline_mode<synchronous>, transform_indices = @transform_1, window_bounds = array<i64: 128, 384>}, {pipeline_mode = #tpu.pipeline_mode<synchronous>, transform_indices = @transform_2, window_bounds = array<i64: 1, 384>}, {pipeline_mode = #tpu.pipeline_mode<synchronous>, transform_indices = @transform_3, window_bounds = array<i64: 128, 128>}, {pipeline_mode = #tpu.pipeline_mode<synchronous>, transform_indices = @transform_4, window_bounds = array<i64: 1, 128>}, {pipeline_mode = #tpu.pipeline_mode<synchronous>, transform_indices = @transform_5, window_bounds = array<i64: 1, 128>}, {transform_indices = @transform_6, window_bounds = array<i64: 1, 16, 128>}]} {
    %c0 = arith.constant 0 : index
    %c0_0 = arith.constant 0 : index
    %c0_1 = arith.constant 0 : index
    %0 = vector.load %arg1[%c0, %c0_0, %c0_1] : memref<1x16x128xf32, #tpu.memory_space<vmem>>, vector<1x16x128xf32>
    %1 = arith.truncf %0 : vector<1x16x128xf32> to vector<1x16x128xbf16>
    %c0_2 = arith.constant 0 : index
    %c0_3 = arith.constant 0 : index
    %2 = vector.load %arg2[%c0_2, %c0_3] : memref<128x384xbf16, #tpu.memory_space<vmem>>, vector<128x384xbf16>
    %cst = arith.constant dense<0.000000e+00> : vector<1x16x384xf32>
    %3 = tpu.matmul %1, %2, %cst {dimension_numbers = #tpu.dot_dimension_numbers<[2], [0], [0, 1], [1], [0, 0, 0, 1, 1, 1], [], []>} : vector<1x16x128xbf16>, vector<128x384xbf16>, vector<1x16x384xf32> -> vector<1x16x384xf32>
    %c0_4 = arith.constant 0 : index
    %c0_5 = arith.constant 0 : index
    %4 = vector.load %arg3[%c0_4, %c0_5] : memref<1x384xf32, #tpu.memory_space<vmem>>, vector<1x384xf32>
    %5 = vector.shape_cast %4 : vector<1x384xf32> to vector<1x1x384xf32>
    %6 = vector.broadcast %5 : vector<1x1x384xf32> to vector<1x16x384xf32>
    %7 = arith.addf %3, %6 : vector<1x16x384xf32>
    %8 = vector.extract_strided_slice %7 {offsets = [0, 0, 0], sizes = [1, 16, 128], strides = [1, 1, 1]} : vector<1x16x384xf32> to vector<1x16x128xf32>
    %9 = vector.extract_strided_slice %7 {offsets = [0, 0, 128], sizes = [1, 16, 128], strides = [1, 1, 1]} : vector<1x16x384xf32> to vector<1x16x128xf32>
    %10 = vector.extract_strided_slice %7 {offsets = [0, 0, 256], sizes = [1, 16, 128], strides = [1, 1, 1]} : vector<1x16x384xf32> to vector<1x16x128xf32>
    %11 = arith.mulf %8, %8 : vector<1x16x128xf32>
    %cst_6 = arith.constant dense<0.000000e+00> : vector<1x128xf32>
    %12 = vector.multi_reduction <add>, %11, %cst_6 [1] : vector<1x16x128xf32> to vector<1x128xf32>
    %13 = vector.shape_cast %12 : vector<1x128xf32> to vector<1x1x128xf32>
    %cst_7 = arith.constant 1.000000e-24 : f32
    %14 = vector.broadcast %cst_7 : f32 to vector<1x1x128xf32>
    %15 = arith.maximumf %13, %14 : vector<1x1x128xf32>
    %16 = math.rsqrt %15 : vector<1x1x128xf32>
    %17 = vector.broadcast %16 : vector<1x1x128xf32> to vector<1x16x128xf32>
    %18 = arith.mulf %8, %17 : vector<1x16x128xf32>
    %19 = arith.mulf %9, %9 : vector<1x16x128xf32>
    %cst_8 = arith.constant dense<0.000000e+00> : vector<1x128xf32>
    %20 = vector.multi_reduction <add>, %19, %cst_8 [1] : vector<1x16x128xf32> to vector<1x128xf32>
    %21 = vector.shape_cast %20 : vector<1x128xf32> to vector<1x1x128xf32>
    %cst_9 = arith.constant 1.000000e-24 : f32
    %22 = vector.broadcast %cst_9 : f32 to vector<1x1x128xf32>
    %23 = arith.maximumf %21, %22 : vector<1x1x128xf32>
    %24 = math.rsqrt %23 : vector<1x1x128xf32>
    %25 = vector.broadcast %24 : vector<1x1x128xf32> to vector<1x16x128xf32>
    %26 = arith.mulf %9, %25 : vector<1x16x128xf32>
    %c0_10 = arith.constant 0 : index
    %c0_11 = arith.constant 0 : index
    %27 = vector.load %arg6[%c0_10, %c0_11] : memref<1x128xf32, #tpu.memory_space<vmem>>, vector<1x128xf32>
    %28 = vector.shape_cast %27 : vector<1x128xf32> to vector<1x1x128xf32>
    %29 = vector.broadcast %28 : vector<1x1x128xf32> to vector<1x16x128xf32>
    %30 = arith.mulf %18, %29 : vector<1x16x128xf32>
    %cst_12 = arith.constant dense<0.000000e+00> : vector<1x128x128xf32>
    %31 = tpu.matmul %30, %26, %cst_12 {dimension_numbers = #tpu.dot_dimension_numbers<[1], [1], [2], [2], [0, 0, 0, 2, 1, 2], [0], [0]>} : vector<1x16x128xf32>, vector<1x16x128xf32>, vector<1x128x128xf32> -> vector<1x128x128xf32>
    %32 = tpu.iota {dimensions = array<i32: 0>} : vector<128x128xi32>
    %33 = tpu.iota {dimensions = array<i32: 1>} : vector<128x128xi32>
    %c3_i32 = arith.constant 3 : i32
    %34 = vector.broadcast %c3_i32 : i32 to vector<128x128xi32>
    %35 = arith.shrsi %32, %34 : vector<128x128xi32>
    %c3_i32_13 = arith.constant 3 : i32
    %36 = vector.broadcast %c3_i32_13 : i32 to vector<128x128xi32>
    %37 = arith.shrsi %33, %36 : vector<128x128xi32>
    %38 = arith.cmpi eq, %35, %37 : vector<128x128xi32>
    %cst_14 = arith.constant 0.000000e+00 : f32
    %cst_15 = arith.constant -1.000000e+30 : f32
    %39 = vector.broadcast %cst_14 : f32 to vector<128x128xf32>
    %40 = vector.broadcast %cst_15 : f32 to vector<128x128xf32>
    %41 = arith.select %38, %39, %40 : vector<128x128xi1>, vector<128x128xf32>
    %42 = vector.shape_cast %41 : vector<128x128xf32> to vector<1x128x128xf32>
    %43 = arith.addf %31, %42 : vector<1x128x128xf32>
    %cst_16 = arith.constant dense<0xFF800000> : vector<1x128xf32>
    %44 = vector.multi_reduction <maximumf>, %43, %cst_16 [2] : vector<1x128x128xf32> to vector<1x128xf32>
    %45 = vector.shape_cast %44 : vector<1x128xf32> to vector<1x128x1xf32>
    %46 = vector.broadcast %45 : vector<1x128x1xf32> to vector<1x128x128xf32>
    %47 = arith.subf %43, %46 : vector<1x128x128xf32>
    %48 = math.exp %47 : vector<1x128x128xf32>
    %cst_17 = arith.constant dense<0.000000e+00> : vector<1x128xf32>
    %49 = vector.multi_reduction <add>, %48, %cst_17 [2] : vector<1x128x128xf32> to vector<1x128xf32>
    %50 = vector.shape_cast %49 : vector<1x128xf32> to vector<1x128x1xf32>
    %51 = tpu.reciprocal %50 {approx = true} : vector<1x128x1xf32> -> vector<1x128x1xf32>
    %52 = vector.broadcast %51 : vector<1x128x1xf32> to vector<1x128x128xf32>
    %53 = arith.mulf %48, %52 : vector<1x128x128xf32>
    %54 = arith.truncf %10 : vector<1x16x128xf32> to vector<1x16x128xbf16>
    %55 = arith.truncf %53 : vector<1x128x128xf32> to vector<1x128x128xbf16>
    %cst_18 = arith.constant dense<0.000000e+00> : vector<1x16x128xf32>
    %56 = tpu.matmul %54, %55, %cst_18 {dimension_numbers = #tpu.dot_dimension_numbers<[2], [2], [1], [1], [0, 0, 0, 1, 1, 1], [0], [0]>} : vector<1x16x128xbf16>, vector<1x128x128xbf16>, vector<1x16x128xf32> -> vector<1x16x128xf32>
    %57 = arith.truncf %56 : vector<1x16x128xf32> to vector<1x16x128xbf16>
    %c0_19 = arith.constant 0 : index
    %c0_20 = arith.constant 0 : index
    %58 = vector.load %arg4[%c0_19, %c0_20] : memref<128x128xbf16, #tpu.memory_space<vmem>>, vector<128x128xbf16>
    %cst_21 = arith.constant dense<0.000000e+00> : vector<1x16x128xf32>
    %59 = tpu.matmul %57, %58, %cst_21 {dimension_numbers = #tpu.dot_dimension_numbers<[2], [0], [0, 1], [1], [0, 0, 0, 1, 1, 1], [], []>} : vector<1x16x128xbf16>, vector<128x128xbf16>, vector<1x16x128xf32> -> vector<1x16x128xf32>
    %c0_22 = arith.constant 0 : index
    %c0_23 = arith.constant 0 : index
    %60 = vector.load %arg5[%c0_22, %c0_23] : memref<1x128xf32, #tpu.memory_space<vmem>>, vector<1x128xf32>
    %61 = vector.shape_cast %60 : vector<1x128xf32> to vector<1x1x128xf32>
    %62 = vector.broadcast %61 : vector<1x1x128xf32> to vector<1x16x128xf32>
    %63 = arith.addf %59, %62 : vector<1x16x128xf32>
    %c0_24 = arith.constant 0 : index
    %c0_25 = arith.constant 0 : index
    %c0_26 = arith.constant 0 : index
    %64 = vector.load %arg7[%c0_24, %c0_25, %c0_26] : memref<1x16x128xf32, #tpu.memory_space<vmem>>, vector<1x16x128xf32>
    tpu.vector_store %arg7[%c0_24, %c0_25, %c0_26], %63 {strides = array<i32>} : memref<1x16x128xf32, #tpu.memory_space<vmem>>, vector<1x16x128xf32>,
    return
  }
  func.func @transform_0(%arg0: i32) -> (i32, i32, i32) {
    %c0_i32 = arith.constant 0 : i32
    %c0_i32_0 = arith.constant 0 : i32
    %c0_i32_1 = arith.constant 0 : i32
    return %arg0, %c0_i32, %c0_i32_0 : i32, i32, i32
  }
  func.func @transform_1(%arg0: i32) -> (i32, i32) {
    %c0_i32 = arith.constant 0 : i32
    %c0_i32_0 = arith.constant 0 : i32
    %c0_i32_1 = arith.constant 0 : i32
    return %c0_i32, %c0_i32_0 : i32, i32
  }
  func.func @transform_2(%arg0: i32) -> (i32, i32) {
    %c0_i32 = arith.constant 0 : i32
    %c0_i32_0 = arith.constant 0 : i32
    %c0_i32_1 = arith.constant 0 : i32
    return %c0_i32, %c0_i32_0 : i32, i32
  }
  func.func @transform_3(%arg0: i32) -> (i32, i32) {
    %c0_i32 = arith.constant 0 : i32
    %c0_i32_0 = arith.constant 0 : i32
    %c0_i32_1 = arith.constant 0 : i32
    return %c0_i32, %c0_i32_0 : i32, i32
  }
  func.func @transform_4(%arg0: i32) -> (i32, i32) {
    %c0_i32 = arith.constant 0 : i32
    %c0_i32_0 = arith.constant 0 : i32
    %c0_i32_1 = arith.constant 0 : i32
    return %c0_i32, %c0_i32_0 : i32, i32
  }
  func.func @transform_5(%arg0: i32) -> (i32, i32) {
    %c0_i32 = arith.constant 0 : i32
    %c0_i32_0 = arith.constant 0 : i32
    %c0_i32_1 = arith.constant 0 : i32
    return %c0_i32, %c0_i32_0 : i32, i32
  }
  func.func @transform_6(%arg0: i32) -> (i32, i32, i32) {
    %c0_i32 = arith.constant 0 : i32
    %c0_i32_0 = arith.constant 0 : i32
    %c0_i32_1 = arith.constant 0 : i32
    return %arg0, %c0_i32, %c0_i32_0 : i32, i32, i32
  }
}

module attributes {stable_mosaic.version = 11 : i64} {
  func.func @_ecsa_kernel(%arg0: i32, %arg1: memref<1x16x128xf32, #tpu.memory_space<vmem>>, %arg2: memref<128x384xbf16, #tpu.memory_space<vmem>>, %arg3: memref<1x384xf32, #tpu.memory_space<vmem>>, %arg4: memref<128x128xbf16, #tpu.memory_space<vmem>>, %arg5: memref<1x128xf32, #tpu.memory_space<vmem>>, %arg6: memref<1x128xf32, #tpu.memory_space<vmem>>, %arg7: memref<1x16x128xf32, #tpu.memory_space<vmem>>) attributes {dimension_semantics = [#tpu.dimension_semantics<parallel>], iteration_bounds = array<i64: 2>, scalar_prefetch = 0 : i64, scratch_operands = 0 : i64, tpu.core_type = #tpu.core_type<tc>, window_params = [{transform_indices = @transform_0, window_bounds = array<i64: 1, 16, 128>}, {pipeline_mode = #tpu.pipeline_mode<synchronous>, transform_indices = @transform_1, window_bounds = array<i64: 128, 384>}, {pipeline_mode = #tpu.pipeline_mode<synchronous>, transform_indices = @transform_2, window_bounds = array<i64: 1, 384>}, {pipeline_mode = #tpu.pipeline_mode<synchronous>, transform_indices = @transform_3, window_bounds = array<i64: 128, 128>}, {pipeline_mode = #tpu.pipeline_mode<synchronous>, transform_indices = @transform_4, window_bounds = array<i64: 1, 128>}, {pipeline_mode = #tpu.pipeline_mode<synchronous>, transform_indices = @transform_5, window_bounds = array<i64: 1, 128>}, {transform_indices = @transform_6, window_bounds = array<i64: 1, 16, 128>}]} {
    %c0 = arith.constant 0 : index
    %c0_0 = arith.constant 0 : index
    %c0_1 = arith.constant 0 : index
    %0 = vector.load %arg1[%c0, %c0_0, %c0_1] : memref<1x16x128xf32, #tpu.memory_space<vmem>>, vector<1x16x128xf32>
    %1 = arith.truncf %0 : vector<1x16x128xf32> to vector<1x16x128xbf16>
    %c0_2 = arith.constant 0 : index
    %c0_3 = arith.constant 0 : index
    %2 = vector.load %arg2[%c0_2, %c0_3] : memref<128x384xbf16, #tpu.memory_space<vmem>>, vector<128x384xbf16>
    %cst = arith.constant dense<0.000000e+00> : vector<1x16x384xf32>
    %3 = tpu.matmul %1, %2, %cst {dimension_numbers = #tpu.dot_dimension_numbers<[2], [0], [0, 1], [1], [0, 0, 0, 1, 1, 1], [], []>} : vector<1x16x128xbf16>, vector<128x384xbf16>, vector<1x16x384xf32> -> vector<1x16x384xf32>
    %c0_4 = arith.constant 0 : index
    %c0_5 = arith.constant 0 : index
    %4 = vector.load %arg3[%c0_4, %c0_5] : memref<1x384xf32, #tpu.memory_space<vmem>>, vector<1x384xf32>
    %5 = vector.shape_cast %4 : vector<1x384xf32> to vector<1x1x384xf32>
    %6 = vector.broadcast %5 : vector<1x1x384xf32> to vector<1x16x384xf32>
    %7 = arith.addf %3, %6 : vector<1x16x384xf32>
    %8 = vector.extract_strided_slice %7 {offsets = [0, 0, 0], sizes = [1, 16, 128], strides = [1, 1, 1]} : vector<1x16x384xf32> to vector<1x16x128xf32>
    %9 = vector.extract_strided_slice %7 {offsets = [0, 0, 128], sizes = [1, 16, 128], strides = [1, 1, 1]} : vector<1x16x384xf32> to vector<1x16x128xf32>
    %10 = vector.extract_strided_slice %7 {offsets = [0, 0, 256], sizes = [1, 16, 128], strides = [1, 1, 1]} : vector<1x16x384xf32> to vector<1x16x128xf32>
    %11 = arith.mulf %8, %8 : vector<1x16x128xf32>
    %cst_6 = arith.constant dense<0.000000e+00> : vector<1x128xf32>
    %12 = vector.multi_reduction <add>, %11, %cst_6 [1] : vector<1x16x128xf32> to vector<1x128xf32>
    %13 = vector.shape_cast %12 : vector<1x128xf32> to vector<1x1x128xf32>
    %cst_7 = arith.constant 1.000000e-24 : f32
    %14 = vector.broadcast %cst_7 : f32 to vector<1x1x128xf32>
    %15 = arith.maximumf %13, %14 : vector<1x1x128xf32>
    %16 = math.rsqrt %15 : vector<1x1x128xf32>
    %17 = vector.broadcast %16 : vector<1x1x128xf32> to vector<1x16x128xf32>
    %18 = arith.mulf %8, %17 : vector<1x16x128xf32>
    %19 = arith.mulf %9, %9 : vector<1x16x128xf32>
    %cst_8 = arith.constant dense<0.000000e+00> : vector<1x128xf32>
    %20 = vector.multi_reduction <add>, %19, %cst_8 [1] : vector<1x16x128xf32> to vector<1x128xf32>
    %21 = vector.shape_cast %20 : vector<1x128xf32> to vector<1x1x128xf32>
    %cst_9 = arith.constant 1.000000e-24 : f32
    %22 = vector.broadcast %cst_9 : f32 to vector<1x1x128xf32>
    %23 = arith.maximumf %21, %22 : vector<1x1x128xf32>
    %24 = math.rsqrt %23 : vector<1x1x128xf32>
    %25 = vector.broadcast %24 : vector<1x1x128xf32> to vector<1x16x128xf32>
    %26 = arith.mulf %9, %25 : vector<1x16x128xf32>
    %c0_10 = arith.constant 0 : index
    %c0_11 = arith.constant 0 : index
    %27 = vector.load %arg6[%c0_10, %c0_11] : memref<1x128xf32, #tpu.memory_space<vmem>>, vector<1x128xf32>
    %28 = vector.shape_cast %27 : vector<1x128xf32> to vector<1x1x128xf32>
    %29 = vector.broadcast %28 : vector<1x1x128xf32> to vector<1x16x128xf32>
    %30 = arith.mulf %18, %29 : vector<1x16x128xf32>
    %cst_12 = arith.constant dense<0.000000e+00> : vector<1x128x128xf32>
    %31 = tpu.matmul %30, %26, %cst_12 {dimension_numbers = #tpu.dot_dimension_numbers<[1], [1], [2], [2], [0, 0, 0, 2, 1, 2], [0], [0]>} : vector<1x16x128xf32>, vector<1x16x128xf32>, vector<1x128x128xf32> -> vector<1x128x128xf32>
    %32 = tpu.iota {dimensions = array<i32: 0>} : vector<128x128xi32>
    %33 = tpu.iota {dimensions = array<i32: 1>} : vector<128x128xi32>
    %c3_i32 = arith.constant 3 : i32
    %34 = vector.broadcast %c3_i32 : i32 to vector<128x128xi32>
    %35 = arith.shrsi %32, %34 : vector<128x128xi32>
    %c3_i32_13 = arith.constant 3 : i32
    %36 = vector.broadcast %c3_i32_13 : i32 to vector<128x128xi32>
    %37 = arith.shrsi %33, %36 : vector<128x128xi32>
    %38 = arith.cmpi eq, %35, %37 : vector<128x128xi32>
    %cst_14 = arith.constant 0.000000e+00 : f32
    %cst_15 = arith.constant -1.000000e+30 : f32
    %39 = vector.broadcast %cst_14 : f32 to vector<128x128xf32>
    %40 = vector.broadcast %cst_15 : f32 to vector<128x128xf32>
    %41 = arith.select %38, %39, %40 : vector<128x128xi1>, vector<128x128xf32>
    %42 = vector.shape_cast %41 : vector<128x128xf32> to vector<1x128x128xf32>
    %43 = arith.addf %31, %42 : vector<1x128x128xf32>
    %cst_16 = arith.constant dense<0xFF800000> : vector<1x128xf32>
    %44 = vector.multi_reduction <maximumf>, %43, %cst_16 [2] : vector<1x128x128xf32> to vector<1x128xf32>
    %45 = vector.shape_cast %44 : vector<1x128xf32> to vector<1x128x1xf32>
    %46 = vector.broadcast %45 : vector<1x128x1xf32> to vector<1x128x128xf32>
    %47 = arith.subf %43, %46 : vector<1x128x128xf32>
    %48 = math.exp %47 : vector<1x128x128xf32>
    %cst_17 = arith.constant dense<0.000000e+00> : vector<1x128xf32>
    %49 = vector.multi_reduction <add>, %48, %cst_17 [2] : vector<1x128x128xf32> to vector<1x128xf32>
    %50 = vector.shape_cast %49 : vector<1x128xf32> to vector<1x128x1xf32>
    %51 = tpu.reciprocal %50 {approx = true} : vector<1x128x1xf32> -> vector<1x128x1xf32>
    %52 = vector.broadcast %51 : vector<1x128x1xf32> to vector<1x128x128xf32>
    %53 = arith.mulf %48, %52 : vector<1x128x128xf32>
    %54 = arith.truncf %10 : vector<1x16x128xf32> to vector<1x16x128xbf16>
    %55 = arith.truncf %53 : vector<1x128x128xf32> to vector<1x128x128xbf16>
    %cst_18 = arith.constant dense<0.000000e+00> : vector<1x16x128xf32>
    %56 = tpu.matmul %54, %55, %cst_18 {dimension_numbers = #tpu.dot_dimension_numbers<[2], [2], [1], [1], [0, 0, 0, 1, 1, 1], [0], [0]>} : vector<1x16x128xbf16>, vector<1x128x128xbf16>, vector<1x16x128xf32> -> vector<1x16x128xf32>
    %57 = arith.truncf %56 : vector<1x16x128xf32> to vector<1x16x128xbf16>
    %c0_19 = arith.constant 0 : index
    %c0_20 = arith.constant 0 : index
    %58 = vector.load %arg4[%c0_19, %c0_20] : memref<128x128xbf16, #tpu.memory_space<vmem>>, vector<128x128xbf16>
    %cst_21 = arith.constant dense<0.000000e+00> : vector<1x16x128xf32>
    %59 = tpu.matmul %57, %58, %cst_21 {dimension_numbers = #tpu.dot_dimension_numbers<[2], [0], [0, 1], [1], [0, 0, 0, 1, 1, 1], [], []>} : vector<1x16x128xbf16>, vector<128x128xbf16>, vector<1x16x128xf32> -> vector<1x16x128xf32>
    %c0_22 = arith.constant 0 : index
    %c0_23 = arith.constant 0 : index
    %60 = vector.load %arg5[%c0_22, %c0_23] : memref<1x128xf32, #tpu.memory_space<vmem>>, vector<1x128xf32>
    %61 = vector.shape_cast %60 : vector<1x128xf32> to vector<1x1x128xf32>
    %62 = vector.broadcast %61 : vector<1x1x128xf32> to vector<1x16x128xf32>
    %63 = arith.addf %59, %62 : vector<1x16x128xf32>
    %c0_24 = arith.constant 0 : index
    %c0_25 = arith.constant 0 : index
    %c0_26 = arith.constant 0 : index
    %64 = vector.load %arg7[%c0_24, %c0_25, %c0_26] : memref<1x16x128xf32, #tpu.memory_space<vmem>>, vector<1x16x128xf32>
    tpu.vector_store %arg7[%c0_24, %c0_25, %c0_26], %63 {strides = array<i32>} : memref<1x16x128xf32, #tpu.memory_space<vmem>>, vector<1x16x128xf32>,
    return
  }
  func.func @transform_0(%arg0: i32) -> (i32, i32, i32) {
    %c0_i32 = arith.constant 0 : i32
    %c0_i32_0 = arith.constant 0 : i32
    %c0_i32_1 = arith.constant 0 : i32
    return %arg0, %c0_i32, %c0_i32_0 : i32, i32, i32
  }
  func.func @transform_1(%arg0: i32) -> (i32, i32) {
    %c0_i32 = arith.constant 0 : i32
    %c0_i32_0 = arith.constant 0 : i32
    %c0_i32_1 = arith.constant 0 : i32
    return %c0_i32, %c0_i32_0 : i32, i32
  }
  func.func @transform_2(%arg0: i32) -> (i32, i32) {
    %c0_i32 = arith.constant 0 : i32
    %c0_i32_0 = arith.constant 0 : i32
    %c0_i32_1 = arith.constant 0 : i32
    return %c0_i32, %c0_i32_0 : i32, i32
  }
  func.func @transform_3(%arg0: i32) -> (i32, i32) {
    %c0_i32 = arith.constant 0 : i32
    %c0_i32_0 = arith.constant 0 : i32
    %c0_i32_1 = arith.constant 0 : i32
    return %c0_i32, %c0_i32_0 : i32, i32
  }
  func.func @transform_4(%arg0: i32) -> (i32, i32) {
    %c0_i32 = arith.constant 0 : i32
    %c0_i32_0 = arith.constant 0 : i32
    %c0_i32_1 = arith.constant 0 : i32
    return %c0_i32, %c0_i32_0 : i32, i32
  }
  func.func @transform_5(%arg0: i32) -> (i32, i32) {
    %c0_i32 = arith.constant 0 : i32
    %c0_i32_0 = arith.constant 0 : i32
    %c0_i32_1 = arith.constant 0 : i32
    return %c0_i32, %c0_i32_0 : i32, i32
  }
  func.func @transform_6(%arg0: i32) -> (i32, i32, i32) {
    %c0_i32 = arith.constant 0 : i32
    %c0_i32_0 = arith.constant 0 : i32
    %c0_i32_1 = arith.constant 0 : i32
    return %arg0, %c0_i32, %c0_i32_0 : i32, i32, i32
  }
}

</mosaic_0001>

<bundles_post_ra>
// kernel: tpu_custom_call.1
= control target key start
LH: loop header
LB: loop body
LE: loop exit
PB: predicated region body
PF: predicated region fallthrough
CT: control target
= control target key end

     0   :  { %11 = vsyncpa [#allocation3], 0  ;;  %s2408_s0 = inlined_call_operand.hbm [shape: f32[2,16,128], index: 0, kind: input, shape index: {}]   ;;  %s2409_s1 = inlined_call_operand.hbm [shape: bf16[128,384], index: 1, kind: input, shape index: {}]   ;;  %s2410_s2 = inlined_call_operand.vmem [shape: f32[1,384], index: 2, kind: input, shape index: {}]   ;;  %s2411_s3 = inlined_call_operand.hbm [shape: bf16[128,128], index: 3, kind: input, shape index: {}]   ;;  %s2412_s4 = inlined_call_operand.vmem [shape: f32[1,128], index: 4, kind: input, shape index: {}]   ;;  %s2413_s5 = inlined_call_operand.vmem [shape: f32[1,128], index: 5, kind: input, shape index: {}]   ;;  %s2414_s6 = inlined_call_operand.hbm [shape: f32[2,16,128], index: 6, kind: output, shape index: {}]  }
   0x1   :  { %13 = vsyncpa [#allocation3 + $0x1], 0 }
   0x2   :  { %14 = vsyncpa [#allocation6], 0 }
   0x3   :  { %15 = vsyncpa [#allocation4], 0 }
   0x4   :  { %17 = vsyncpa [#allocation4 + $0x1], 0  ;;  %s1911_s21 = smov 0   ;;  %s1913_s22 = smov 0  }
   0x5   :  { %s1915_s23 = smov 0   ;;  %s1917_s24 = smov 0  }
   0x6 LB: > { %s1932_s25 = sadd.s32 4294967295, %s1858_s24   ;;  %s1308_s26 = sadd.s32 4294967294, %s1858_s24   ;;  %s1858_s24 = sphi %s1917_s24, %s2434_s24   ;;  %s1854_s23 = sphi %s1915_s23, %s2433_s23   ;;  %s1850_s22 = sphi %s1913_s22, %s2432_s22   ;;  %s1846_s21 = sphi %s1911_s21, %s2431_s21  }
   0x7   : > { %p43_p0 = scmp.ne.s32.totalorder %s1850_s22, %s1846_s21  ;;  %p2415_p1 = scmp.eq.s32.totalorder %s1932_s25, 0 }
   0x8   : > { %p178_p3 = scmp.eq.s32.totalorder %s1308_s26, 1  ;;  %p1309_p5 = scmp.ge.s32.totalorder %s1858_s24, 1 }
   0x9   : > { %p1941_p4 = por %p2415_p1, %p43_p0  ;;  %p185_p7 = scmp.lt.s32.totalorder %s1858_s24, 3 }
   0xa   : > { %p1946_p6 = por %p178_p3, %p43_p0  ;;  %s1860_s30 = smov [#allocation5]  }
   0xb   : > { %s2418_s27 = scalar_select %p1941_p4, 1, 0 }
   0xc   : > { %s2419_s28 = scalar_select %p1946_p6, 1, 0 }
   0xd   : > { %p1951_p8 = pnand %p1309_p5, %p185_p7  ;;  %s197_s7 = sshll.u32 %s1860_s30, 4  ;;  %s1955_s7 = int_to_ptr.vmem [resolvable:$true] %s197_s7 }
   0xe   : > { %s1861_s9 = smov [#allocation7]   ;;  %s1702_s13 = scalar_lea.hbm %s2409_s1, 3072 }
   0xf   : > { %p1527_p9 = pneg %p1951_p8  ;;  %s213_s10 = sshll.u32 %s1861_s9, 4  ;;  %s1966_s10 = int_to_ptr.vmem [resolvable:$true] %s213_s10 }
  0x10   : > { %p1703_p12 = scmp.ne.s32.totalorder %s2409_s1, %s1702_s13  ;;  %p1709_p5 = scmp.lt.u32.totalorder %s1702_s13, %s2409_s1 }
  0x11   : > { %p1962_p11 = pnand %p1527_p9, %p2415_p1 }
  0x13   : > { %p1704_p13 = pneg %p1962_p11 }
  0x15   : > { %p1705_p0 = pnand %p1704_p13, %p1703_p12 }
  0x17   : > { %p1706_p3 = pneg %p1705_p0 }
  0x19   : > { %p1711_p7 = pnand %p1709_p5, %p1706_p3 }
  0x1b   : > { %1714 = shalt.err (!%p1711_p7)
}
  0x1c   : > { %s1715_s18 = scalar_lea.vmem %s1955_s7, 3072  ;;  %p1723_p2 = scmp.lt.s32.totalorder %s1955_s7, %s1955_s7 }
  0x1d   : > { %p1716_p9 = scmp.ne.s32.totalorder %s1955_s7, %s1715_s18  ;;  %p1724_p12 = scmp.lt.s32.totalorder %s1715_s18, %s1715_s18 }
  0x1f   : > { %p1718_p10 = pnand %p1716_p9, %p1704_p13  ;;  %p1725_p0 = por %p1724_p12, %p1723_p2 }
  0x21   : > { %p1719_p1 = pneg %p1718_p10 }
  0x23   : > { %p1726_p6 = pnand %p1725_p0, %p1719_p1 }
  0x25   : > { %1729 = shalt.err (!%p1726_p6)
}
  0x26   : > { %s1862_s19 = smov 192   ;;  %s1863_s20 = smov 12  }
  0x27   : > { %1530 = dma.hbm_to_vmem [thread:$0]  (!%p1962_p11), %s2409_s1, 3072, %s1955_s7, [#allocation6], %s1862_s19, %s1862_s19, %s1863_s20  }
  0x28   : > { %s1730_s12 = scalar_lea.hbm %s2411_s3, 1024 }
  0x29   : > { %p1731_p2 = scmp.ne.s32.totalorder %s2411_s3, %s1730_s12  ;;  %p1737_p10 = scmp.lt.u32.totalorder %s1730_s12, %s2411_s3 }
  0x2b   : > { %p1733_p1 = pnand %p1731_p2, %p1704_p13 }
  0x2d   : > { %p1734_p6 = pneg %p1733_p1 }
  0x2f   : > { %p1739_p3 = pnand %p1737_p10, %p1734_p6 }
  0x31   : > { %1742 = shalt.err (!%p1739_p3)
}
  0x32   : > { %s1743_s7 = scalar_lea.vmem %s1966_s10, 1024  ;;  %p1751_p12 = scmp.lt.s32.totalorder %s1966_s10, %s1966_s10 }
  0x33   : > { %p1744_p5 = scmp.ne.s32.totalorder %s1966_s10, %s1743_s7  ;;  %p1752_p0 = scmp.lt.s32.totalorder %s1743_s7, %s1743_s7 }
  0x35   : > { %p1746_p7 = pnand %p1744_p5, %p1704_p13  ;;  %p1753_p2 = por %p1752_p0, %p1751_p12 }
  0x37   : > { %p1747_p9 = pneg %p1746_p7 }
  0x39   : > { %p1754_p1 = pnand %p1753_p2, %p1747_p9 }
  0x3b   : > { %1757 = shalt.err (!%p1754_p1)
}
  0x3c   : > { %s1864_s17 = smov 64   ;;  %s1865_s18 = smov 4  }
  0x3d   : > { %1533 = dma.hbm_to_vmem [thread:$0]  (!%p1962_p11), %s2411_s3, 1024, %s1966_s10, [#allocation6], %s1864_s17, %s1864_s17, %s1865_s18  }
  0x3e   : > { %s2021_s26 = sadd.s32 1, %s1858_s24   ;;  %s30_s9 = sadd.s32 1, %s1854_s23 }
  0x3f   : > { %s27_s30 = ssub.s32 %s1858_s24, %s2021_s26  ;;  %p37_p6 = scmp.ne.s32.totalorder %s1854_s23, %s1850_s22 }
  0x40   : > { %p28_p13 = scmp.eq.s32.totalorder %s27_s30, 0  ;;  %p38_p10 = scmp.eq.s32.totalorder %s1858_s24, 0 }
  0x41   : > { %p2422_p5 = scmp.eq.s32.totalorder %s1932_s25, 1  ;;  %p1544_p9 = scmp.lt.s32.totalorder %s1858_s24, 2 }
  0x42   : > { %s2030_s11 = scalar_select %p28_p13, %s1854_s23, %s30_s9  }
  0x43   : > { %p39_p3 = por %p38_p10, %p37_p6  ;;  %p2034_p7 = por %p2422_p5, %p37_p6 }
  0x44   : > { %s233_s8 = sand.u32 1, %s1854_s23   ;;  %s1376_s10 = sshll.u32 %s1858_s24, 8 }
  0x45   : > { %s2423_s12 = scalar_select %p2034_p7, 1, 0 }
  0x46   : > { %s1313_s13 = sshll.u32 %s233_s8, 4  ;;  %s2044_s16 = scalar_lea.hbm %s2408_s0, %s1376_s10 }
  0x47   : > { %s237_s7 = scalar_lea.vmem [#allocation2], %s1313_s13  ;;  %p2048_p11 = pnand %p1544_p9, %p39_p3 }
  0x48   : > { %s244_s17 = sshll.u32 %s237_s7, 4  ;;  %s2052_s19 = scalar_lea.sflag [#allocation3], %s233_s8  ;;  %s2046_s17 = int_to_ptr.vmem [resolvable:$true] %s244_s17 }
  0x49   : > { %s1758_s20 = scalar_lea.hbm %s2044_s16, 256  ;;  %p1760_p0 = pneg %p2048_p11 }
  0x4a   : > { %p1759_p12 = scmp.ne.s32.totalorder %s2044_s16, %s1758_s20  ;;  %s1763_s13 = scalar_lea.hbm %s2408_s0, 512 }
  0x4b   : > { %p1764_p13 = scmp.lt.u32.totalorder %s2044_s16, %s2408_s0  ;;  %p1765_p6 = scmp.lt.u32.totalorder %s1763_s13, %s1758_s20 }
  0x4c   : > { %p1761_p2 = pnand %p1760_p0, %p1759_p12  ;;  %p1767_p3 = scmp.lt.u32.totalorder %s1758_s20, %s2044_s16 }
  0x4d   : > { %p1766_p10 = por %p1765_p6, %p1764_p13 }
  0x4e   : > { %p1762_p1 = pneg %p1761_p2 }
  0x4f   : > { %p1768_p5 = por %p1767_p3, %p1766_p10 }
  0x51   : > { %p1769_p9 = pnand %p1768_p5, %p1762_p1 }
  0x53   : > { %1772 = shalt.err (!%p1769_p9)
}
  0x54   : > { %s1773_s8 = scalar_lea.vmem %s2046_s17, 256  ;;  %s1866_s15 = smov [#allocation2]  }
  0x55   : > { %p1774_p12 = scmp.ne.s32.totalorder %s2046_s17, %s1773_s8  ;;  %s1778_s7 = sshll.u32 %s1866_s15, 4  ;;  %s1779_s7 = int_to_ptr.vmem [resolvable:$false] %s1778_s7 }
  0x56   : > { %s1780_s30 = scalar_lea.vmem %s1779_s7, 512  ;;  %p1781_p4 = scmp.lt.s32.totalorder %s2046_s17, %s1779_s7 }
  0x57   : > { %p1776_p2 = pnand %p1774_p12, %p1760_p0  ;;  %p1782_p13 = scmp.lt.s32.totalorder %s1780_s30, %s1773_s8 }
  0x59   : > { %p1777_p7 = pneg %p1776_p2  ;;  %p1783_p6 = por %p1782_p13, %p1781_p4 }
  0x5b   : > { %p1784_p10 = pnand %p1783_p6, %p1777_p7 }
  0x5d   : > { %1787 = shalt.err (!%p1784_p10)
}
  0x5e   : > { %s1867_s20 = smov 128   ;;  %s1868_s9 = smov 8  }
  0x5f   : > { %1537 = dma.hbm_to_vmem [thread:$0]  (!%p2048_p11), %s2044_s16, 256, %s2046_s17, %s2052_s19, %s1867_s20, %s1867_s20, %s1868_s9  }
  0x60   : > { %256 = sbr.rel (%p1951_p8) target bundleno = 1569 (0x621), region = 44  ;;  %s2083_s13 = sand.u32 (!%p1951_p8), 1, %s1850_s22  }
  0x61   : > { %s1317_s10 = sshll.u32 (!%p1951_p8), %s2083_s13, 4  ;;  %s259_s14 = scalar_lea.sflag (!%p1951_p8), [#allocation3], %s2083_s13 }
  0x62   : > { %s2089_s8 = scalar_lea.vmem (!%p1951_p8), [#allocation2], %s1317_s10  ;;  %p2425_p4 = scmp.ne.s32.totalorder (!%p1951_p8), %s2418_s27, 0 }
  0x67   : > { %1833 = dma.done.wait (%p2425_p4), %s259_s14, 256  }
  0x68   : > { %1835 = vsyncadd (%p2425_p4), %s259_s14, 4294967040  ;;  %p2426_p7 = scmp.eq.s32.totalorder %s1932_s25, 0 }
  0x6a   : > { %1837 = dma.done.wait (%p2426_p7), [#allocation6], 4096   ;;  %p2427_p8 = pmov %p2426_p7 }
  0x6b   : > { %v1869_v0 = vmov 0   ;;  %v1594_v1 = vld [vmem:[#allocation5 + $0x4] ss:$12 sps:$4 sm:$0xff]   ;;  %v1596_v2 = vld [vmem:[#allocation5] ss:$12 sps:$4 sm:$0xff]   ;;  %v337_v20 = vlaneseq  ;;  %vm699_vm0 = vcmask 130048  }
  0x6c   : > { %1839 = vsyncadd (%p2427_p8), [#allocation6], 4294963200  ;;  %512 = vmatprep.mubr.bf16.mxu0 %v1869_v0  ;;  %480 = vmatprep.subr.bf16.mxu0 %v1594_v1  ;;  %v1597_v3 = vld [vmem:[#allocation5 + $0x1c] ss:$12 sps:$4 sm:$0xff]   ;;  %v1599_v4 = vld [vmem:[#allocation5 + $0x18] ss:$12 sps:$4 sm:$0xff]  }
  0x6d   : > { %481 = vmatpush1.bf16.msra.mxu0 %v1596_v2  ;;  %v1600_v5 = vld [vmem:[#allocation5 + $0x34] ss:$12 sps:$4 sm:$0xff]   ;;  %v1602_v6 = vld [vmem:[#allocation5 + $0x30] ss:$12 sps:$4 sm:$0xff]   ;;  %v1603_v7 = vld [vmem:[#allocation5 + $0x4c] ss:$12 sps:$4 sm:$0xff]  }
  0x6e   : > { %482 = vmatprep.subr.bf16.mxu0 %v1597_v3  ;;  %v1605_v8 = vld [vmem:[#allocation5 + $0x48] ss:$12 sps:$4 sm:$0xff]   ;;  %v1606_v9 = vld [vmem:[#allocation5 + $0x64] ss:$12 sps:$4 sm:$0xff]   ;;  %v1608_v10 = vld [vmem:[#allocation5 + $0x60] ss:$12 sps:$4 sm:$0xff]  }
  0x6f   : > { %v1609_v11 = vld [vmem:[#allocation5 + $0x7c] ss:$12 sps:$4 sm:$0xff]   ;;  %v1611_v12 = vld [vmem:[#allocation5 + $0x78] ss:$12 sps:$4 sm:$0xff]   ;;  %v1612_v13 = vld [vmem:[#allocation5 + $0x94] ss:$12 sps:$4 sm:$0xff]  }
  0x70   : > { %v1614_v14 = vld [vmem:[#allocation5 + $0x90] ss:$12 sps:$4 sm:$0xff]   ;;  %v1615_v15 = vld [vmem:[#allocation5 + $0xac] ss:$12 sps:$4 sm:$0xff]   ;;  %v1617_v16 = vld [vmem:[#allocation5 + $0xa8] ss:$12 sps:$4 sm:$0xff]  }
  0x71   : > { %483 = vmatpush1.bf16.msra.mxu0 %v1599_v4  ;;  %v300_v17 = vld [vmem:[%s2089_s8] sm:$0xff]  ;;  %v301_v18 = vld [vmem:[%s2089_s8 + $0x8] sm:$0xff]  ;;  %v2105_v21 = vshrl.u32 %v337_v20, 7  ;;  %vm1872_vm13 = vmmov 0   ;;  %s298_s15 = scalar_lea.vmem [#allocation8], %s1317_s10  ;;  %s1377_s30 = sshll.u32 %s1932_s25, 8 }
  0x72   : > { %484 = vmatprep.subr.bf16.mxu0 %v1600_v5  ;;  %v2101_v19 = vpack.c.bf16 %v301_v18, %v300_v17  ;;  %v2111_v23 = vld [vmem:[%s2410_s2] sm:$0x7]  ;;  %v1618_v17 = vld [vmem:[#allocation5 + $0x8] ss:$12 sps:$4 sm:$0xff]   ;;  %v1870_v18 = vmov 0.0   ;;  %s1216_s7 = sshll.u32 %s298_s15, 4  ;;  %s2364_s14 = scalar_lea.hbm %s2414_s6, %s1377_s30  ;;  %s2359_s7 = int_to_ptr.vmem [resolvable:$true] %s1216_s7 }
  0x73   : > { %v339_v22 = vsub.s32 0, %v2105_v21  ;;  %v343_v24 = vsub.s32 1, %v2105_v21  ;;  %v1345_v56 = vld [vmem:[%s2413_s5] ss:$0 sm:$0xff]  ;;  %1423 = vmatprep.subr.bf16.mxu1 %v1870_v18  ;;  %1439 = vmatprep.mubr.msk.bf16.mxu1 %vm1872_vm13, %v1870_v18  ;;  %s1203_s10 = scalar_lea.sflag [#allocation4], %s2083_s13  ;;  %s1788_s25 = scalar_lea.vmem %s2359_s7, 256 }
  0x74   : > { %1424 = vmatpush3.bf16.msra.mxu1 %v1618_v17  ;;  %p1789_p11 = scmp.ne.s32.totalorder %s2359_s7, %s1788_s25  ;;  %p2428_p0 = scmp.ne.s32.totalorder %s2423_s12, 0 }
  0x75   : > { %485 = vmatpush1.bf16.msra.mxu0 %v1602_v6  ;;  %v340_v25 = vrot.slane %v2111_v23, %v339_v22  ;;  %v344_v26 = vrot.slane %v2111_v23, %v343_v24  ;;  %v1619_v22 = vld [vmem:[#allocation5 + $0x20] ss:$12 sps:$4 sm:$0xff]   ;;  %1425 = vmatprep.subr.bf16.mxu1 %v1870_v18  ;;  %v1620_v24 = vld [vmem:[#allocation5 + $0x38] ss:$12 sps:$4 sm:$0xff]   ;;  %s1873_s8 = smov [#allocation8]  }
  0x76   : > { %486 = vmatprep.subr.bf16.mxu0 %v1603_v7  ;;  %p1790_p1 = pnand %p1789_p11, %p2428_p0  ;;  %s1792_s27 = sshll.u32 %s1873_s8, 4  ;;  %s1793_s27 = int_to_ptr.vmem [resolvable:$false] %s1792_s27 }
  0x77   : > { %s1794_s29 = scalar_lea.vmem %s1793_s27, 512  ;;  %p1795_p5 = scmp.lt.s32.totalorder %s2359_s7, %s1793_s27 }
  0x78   : > { %1426 = vmatpush3.bf16.msra.mxu1 %v1619_v22  ;;  %p1791_p3 = pneg %p1790_p1  ;;  %p1796_p9 = scmp.lt.s32.totalorder %s1794_s29, %s1788_s25 }
  0x79   : > { %487 = vmatpush1.bf16.msra.mxu0 %v1605_v8  ;;  %1427 = vmatprep.subr.bf16.mxu1 %v1870_v18 }
  0x7a   : > { %488 = vmatprep.subr.bf16.mxu0 %v1606_v9  ;;  %p1797_p12 = por %p1796_p9, %p1795_p5 }
  0x7c   : > { %1428 = vmatpush3.bf16.msra.mxu1 %v1620_v24  ;;  %v613_v24 = vadd.s32 104, %v2105_v21  ;;  %p1798_p2 = pnand %p1797_p12, %p1791_p3 }
  0x7d   : > { %489 = vmatpush1.bf16.msra.mxu0 %v1608_v10  ;;  %1429 = vmatprep.subr.bf16.mxu1 %v1870_v18 }
  0x7e   : > { %490 = vmatprep.subr.bf16.mxu0 %v1609_v11 }
  0x81   : > { %491 = vmatpush1.bf16.msra.mxu0 %v1611_v12 }
  0x82   : > { %492 = vmatprep.subr.bf16.mxu0 %v1612_v13 }
  0x85   : > { %493 = vmatpush1.bf16.msra.mxu0 %v1614_v14 }
  0x86   : > { %494 = vmatprep.subr.bf16.mxu0 %v1615_v15 }
  0x89   : > { %495 = vmatpush1.bf16.msra.mxu0 %v1617_v16 }
  0x8c   : > { %513 = vmatmul.mubr.bf16.vlgmr.msra.gmra.mrb[0].mxu0 %v2101_v19 }
 0x15f   : > { %v514_v27 = vpop.f32.mrb[0].mxu0 }
 0x160   : > { %v515_v28 = vadd.f32 %v514_v27, %v340_v25  ;;  %v516_v29 = vpop.f32.mrb[1].mxu0 }
 0x161   : > { %v517_v30 = vadd.f32 %v516_v29, %v344_v26  ;;  %v518_v31 = vpop.f32.mrb[2].mxu0  ;;  %v603_v29 = vadd.s32 24, %v2105_v21 }
 0x162   : > { %v519_v32 = vadd.f32 %v518_v31, %v340_v25  ;;  %v520_v33 = vpop.f32.mrb[3].mxu0  ;;  %v564_v35 = vmul.f32 %v515_v28, %v515_v28  ;;  %v617_v25 = vand.u32 127, %v337_v20  ;;  %v602_v31 = vadd.s32 16, %v2105_v21 }
 0x163   : > { %v521_v34 = vadd.f32 %v520_v33, %v344_v26  ;;  %v577_v37 = vmul.f32 %v517_v30, %v517_v30  ;;  %v601_v26 = vadd.s32 8, %v2105_v21 }
 0x164   : > { %v565_v36 = vmul.f32 %v519_v32, %v519_v32  ;;  %v2142_v27 = vshra.s32 %v617_v25, 3  ;;  %v1625_v25 = vld [vmem:[#allocation5 + $0xb0] ss:$12 sps:$4 sm:$0xff]  }
 0x165   : > { %v578_v38 = vmul.f32 %v521_v34, %v521_v34 }
 0x166   : > { %v566_v39 = vadd.f32 %v565_v36, %v564_v35  ;;  %v620_v35 = vshra.s32 %v602_v31, 3 }
 0x167   : > { %v579_v40 = vadd.f32 %v578_v38, %v577_v37 }
 0x168   : > { %v567_v41 = vrot.slane %v566_v39, 4  ;;  %vm637_vm4 = vcmp.eq.s32.totalorder %v620_v35, %v2142_v27 }
 0x169   : > { %v580_v42 = vrot.slane %v579_v40, 4 }
 0x16a   : > { %v568_v43 = vadd.f32 %v567_v41, %v566_v39  ;;  %v605_v39 = vadd.s32 40, %v2105_v21 }
 0x16b   : > { %v581_v44 = vadd.f32 %v580_v42, %v579_v40 }
 0x16c   : > { %v569_v45 = vrot.slane %v568_v43, 2 }
 0x16d   : > { %v582_v46 = vrot.slane %v581_v44, 2 }
 0x16e   : > { %v570_v47 = vadd.f32 %v569_v45, %v568_v43  ;;  %v623_v43 = vshra.s32 %v605_v39, 3 }
 0x16f   : > { %v583_v48 = vadd.f32 %v582_v46, %v581_v44  ;;  %v604_v44 = vadd.s32 32, %v2105_v21 }
 0x170   : > { %v571_v49 = vrot.slane %v570_v47, 1  ;;  %vm640_vm5 = vcmp.eq.s32.totalorder %v623_v43, %v2142_v27 }
 0x171   : > { %v584_v50 = vrot.slane %v583_v48, 1 }
 0x172   : > { %v572_v51 = vadd.f32 %v571_v49, %v570_v47  ;;  %v622_v49 = vshra.s32 %v604_v44, 3 }
 0x173   : > { %v585_v52 = vadd.f32 %v584_v50, %v583_v48  ;;  %v607_v50 = vadd.s32 56, %v2105_v21 }
 0x174   : > { %v573_v53 = vmax.f32 %v572_v51, 1e-24  ;;  %vm639_vm6 = vcmp.eq.s32.totalorder %v622_v49, %v2142_v27 }
 0x175   : > { %v586_v54 = vmax.f32 %v585_v52, 1e-24  ;;  %v625_v52 = vshra.s32 %v607_v50, 3 }
 0x176   : > { %1634 = vrsqrt.f32 %v573_v53  ;;  %v606_v53 = vadd.s32 48, %v2105_v21 }
 0x177   : > { %1636 = vrsqrt.f32 %v586_v54  ;;  %vm642_vm7 = vcmp.eq.s32.totalorder %v625_v52, %v2142_v27 }
 0x180   : > { %v1635_v55 = vpop.eup %1634 }
 0x181   : > { %v1637_v57 = vpop.eup %1636  ;;  %v576_v58 = vmul.f32 %v1635_v55, %v519_v32  ;;  %v575_v59 = vmul.f32 %v1635_v55, %v515_v28  ;;  %v618_v28 = vshra.s32 %v2105_v21, 3  ;;  %v1871_v32 = vmov -1e+30  }
 0x182   : > { %v589_v60 = vmul.f32 %v1637_v57, %v521_v34  ;;  %v588_v61 = vmul.f32 %v1637_v57, %v517_v30  ;;  %v619_v30 = vshra.s32 %v601_v26, 3  ;;  %v621_v34 = vshra.s32 %v603_v29, 3 }
 0x183   : > { %v597_v62 = vmul.f32 %v1345_v56, %v575_v59  ;;  %v598_v0 = vmul.f32 %v1345_v56, %v576_v58  ;;  %vm635_vm1 = vcmp.eq.s32.totalorder %v618_v28, %v2142_v27  ;;  %v653_v42 = vsel %vm637_vm4, 0.0, %v1871_v32 }
 0x184   : > { %v1511_v63 = vpack.c.bf16 %v589_v60, %v588_v61  ;;  %v651_v33 = vsel %vm635_vm1, 0.0, %v1871_v32  ;;  %vm636_vm2 = vcmp.eq.s32.totalorder %v619_v30, %v2142_v27  ;;  %vm638_vm3 = vcmp.eq.s32.totalorder %v621_v34, %v2142_v27  ;;  %v1621_v60 = vld [vmem:[#allocation5 + $0x50] ss:$12 sps:$4 sm:$0xff]  }
 0x185   : > { %667 = vxpose.xlu0.b32.start [1/2] (short) %v597_v62, 128  ;;  %v652_v38 = vsel %vm636_vm2, 0.0, %v1871_v32  ;;  %v654_v41 = vsel %vm638_vm3, 0.0, %v1871_v32  ;;  %v656_v51 = vsel %vm640_vm5, 0.0, %v1871_v32  ;;  %v655_v57 = vsel %vm639_vm6, 0.0, %v1871_v32  ;;  %1430 = vmatpush3.bf16.msra.mxu1 %v1621_v60 }
 0x186   : > { %1512 = vmatprep.subr.bf16.mxu0 %v1511_v63  ;;  %v624_v58 = vshra.s32 %v606_v53, 3  ;;  %v609_v59 = vadd.s32 72, %v2105_v21  ;;  %v658_v62 = vsel %vm642_vm7, 0.0, %v1871_v32  ;;  %1431 = vmatprep.subr.bf16.mxu1 %v1870_v18  ;;  %v612_v28 = vadd.s32 96, %v2105_v21 }
 0x187   : > { %1514 = vmatpush3.bf16.msra.mxu0 %v1511_v63  ;;  %v631_v30 = vshra.s32 %v613_v24, 3 }
 0x188   : > { %1491 = vmatprep.subr.bf16.mxu0 %v1870_v18  ;;  %vm641_vm8 = vcmp.eq.s32.totalorder %v624_v58, %v2142_v27  ;;  %v627_v63 = vshra.s32 %v609_v59, 3 }
 0x189   : > { %668 = vxpose.xlu0.b32.end [2/2] (short) %v598_v0, 128  ;;  %v608_v0 = vadd.s32 64, %v2105_v21  ;;  %vm648_vm14 = vcmp.eq.s32.totalorder %v631_v30, %v2142_v27 }
 0x18a   : > { %vm644_vm9 = vcmp.eq.s32.totalorder %v627_v63, %v2142_v27  ;;  %v664_v39 = vsel %vm648_vm14, 0.0, %v1871_v32 }
 0x205   : > { %v683_v1 = vpop.trf.xlu0 }
 0x206   : > { %1447 = vmatprep.mubr.msk.f32.mxu0 %vm699_vm0, %v683_v1  ;;  %v1622_v1 = vld [vmem:[#allocation5 + $0x68] ss:$12 sps:$4 sm:$0xff]  }
 0x207   : > { %1432 = vmatpush3.bf16.msra.mxu1 %v1622_v1 }
 0x208   : > { %1433 = vmatprep.subr.bf16.mxu1 %v1870_v18 }
 0x209   : > { %v684_v2 = vpop.trf.xlu0 }
 0x20a   : > { %1448 = vmatmul.mubr.msk.f32.vlgmr.msra.gmra.mrb[4].mxu0 %vm699_vm0, %v684_v2 }
 0x20d   : > { %v685_v3 = vpop.trf.xlu0 }
 0x20e   : > { %1450 = vmatprep.mubr.msk.f32.mxu0 %vm699_vm0, %v685_v3 }
 0x211   : > { %v686_v4 = vpop.trf.xlu0 }
 0x212   : > { %1451 = vmatmul.mubr.msk.f32.gmra.mrb[6].mxu0 %vm699_vm0, %v686_v4 }
 0x215   : > { %v687_v5 = vpop.trf.xlu0 }
 0x216   : > { %1453 = vmatprep.mubr.msk.f32.mxu0 %vm699_vm0, %v687_v5  ;;  %v657_v5 = vsel %vm641_vm8, 0.0, %v1871_v32 }
 0x219   : > { %v688_v6 = vpop.trf.xlu0 }
 0x21a   : > { %1454 = vmatmul.mubr.msk.f32.gmra.mrb[8].mxu0 %vm699_vm0, %v688_v6  ;;  %v626_v6 = vshra.s32 %v608_v0, 3 }
 0x21c   : > { %vm643_vm10 = vcmp.eq.s32.totalorder %v626_v6, %v2142_v27 }
 0x21d   : > { %v689_v7 = vpop.trf.xlu0  ;;  %v659_v17 = vsel %vm643_vm10, 0.0, %v1871_v32 }
 0x21e   : > { %1456 = vmatprep.mubr.msk.f32.mxu0 %vm699_vm0, %v689_v7  ;;  %v611_v7 = vadd.s32 88, %v2105_v21 }
 0x221   : > { %v690_v8 = vpop.trf.xlu0 }
 0x222   : > { %1457 = vmatmul.mubr.msk.f32.gmra.mrb[10].mxu0 %vm699_vm0, %v690_v8  ;;  %v1623_v8 = vld [vmem:[#allocation5 + $0x80] ss:$12 sps:$4 sm:$0xff]  }
 0x223   : > { %1434 = vmatpush3.bf16.msra.mxu1 %v1623_v8 }
 0x224   : > { %1435 = vmatprep.subr.bf16.mxu1 %v1870_v18 }
 0x225   : > { %v691_v9 = vpop.trf.xlu0 }
 0x226   : > { %1459 = vmatprep.mubr.msk.f32.mxu0 %vm699_vm0, %v691_v9 }
 0x229   : > { %v692_v10 = vpop.trf.xlu0 }
 0x22a   : > { %1460 = vmatmul.mubr.msk.f32.gmra.mrb[12].mxu0 %vm699_vm0, %v692_v10  ;;  %v660_v10 = vsel %vm644_vm9, 0.0, %v1871_v32 }
 0x22d   : > { %v693_v11 = vpop.trf.xlu0 }
 0x22e   : > { %1462 = vmatprep.mubr.msk.f32.mxu0 %vm699_vm0, %v693_v11  ;;  %v629_v11 = vshra.s32 %v611_v7, 3 }
 0x230   : > { %vm646_vm11 = vcmp.eq.s32.totalorder %v629_v11, %v2142_v27 }
 0x231   : > { %v694_v12 = vpop.trf.xlu0  ;;  %v662_v29 = vsel %vm646_vm11, 0.0, %v1871_v32 }
 0x232   : > { %1463 = vmatmul.mubr.msk.f32.gmra.mrb[14].mxu0 %vm699_vm0, %v694_v12  ;;  %v610_v12 = vadd.s32 80, %v2105_v21 }
 0x234   : > { %v628_v22 = vshra.s32 %v610_v12, 3 }
 0x235   : > { %v695_v13 = vpop.trf.xlu0 }
 0x236   : > { %1465 = vmatprep.mubr.msk.f32.mxu0 %vm699_vm0, %v695_v13  ;;  %vm645_vm12 = vcmp.eq.s32.totalorder %v628_v22, %v2142_v27 }
 0x237   : > { %v661_v35 = vsel %vm645_vm12, 0.0, %v1871_v32 }
 0x239   : > { %v696_v14 = vpop.trf.xlu0 }
 0x23a   : > { %1466 = vmatmul.mubr.msk.f32.gmra.mrb[16].mxu0 %vm699_vm0, %v696_v14  ;;  %v1624_v14 = vld [vmem:[#allocation5 + $0x98] ss:$12 sps:$4 sm:$0xff]  }
 0x23b   : > { %1436 = vmatpush3.bf16.msra.mxu1 %v1624_v14 }
 0x23c   : > { %1437 = vmatprep.subr.bf16.mxu1 %v1870_v18 }
 0x23d   : > { %v697_v15 = vpop.trf.xlu0 }
 0x23e   : > { %1468 = vmatprep.mubr.msk.f32.mxu0 %vm699_vm0, %v697_v15 }
 0x23f   : > { %1438 = vmatpush3.bf16.msra.mxu1 %v1625_v25 }
 0x240   : > { %1471 = vmatprep.subr.bf16.mxu1 %v1870_v18 }
 0x241   : > { %v698_v16 = vpop.trf.xlu0 }
 0x242   : > { %1469 = vmatmul.mubr.msk.f32.gmra.mrb[18].mxu0 %vm699_vm0, %v698_v16  ;;  %1440 = vmatmul.mubr.bf16.vlgmr.msra.gmra.mrb[0].mxu1 %v2101_v19 }
 0x243   : > { %1507 = vmatprep.mubr.msk.bf16.mxu0 %vm1872_vm13, %v1870_v18  ;;  %1487 = vmatprep.mubr.msk.bf16.mxu1 %vm1872_vm13, %v1870_v18 }
 0x2dd   : > { %v1449_v20 = vpop.f32.mrb[4].mxu0 }
 0x2de   : > { %v814_v36 = vpop.f32.mrb[5].mxu0  ;;  %v2157_v40 = vadd.f32 %v1449_v20, %v652_v38  ;;  %v630_v20 = vshra.s32 %v612_v28, 3 }
 0x2df   : > { %v2150_v37 = vadd.f32 %v814_v36, %v651_v33  ;;  %v614_v36 = vadd.s32 112, %v2105_v21 }
 0x2e0   : > { %vm647_vm15 = vcmp.eq.s32.totalorder %v630_v20, %v2142_v27 }
 0x2e1   : > { %893 = vmax.xlane.f32.xlu1 %v2150_v37  ;;  %v632_v43 = vshra.s32 %v614_v36, 3 }
 0x2e3   : > { %vm649_vm0 = vcmp.eq.s32.totalorder %v632_v43, %v2142_v27 }
 0x2e4   : > { %v665_v50 = vsel %vm649_vm0, 0.0, %v1871_v32 }
 0x2e5   : > { %895 = vmax.xlane.f32.xlu1 %v2157_v40  ;;  %v1452_v45 = vpop.f32.mrb[6].mxu0 }
 0x2e6   : > { %v2163_v46 = vadd.f32 %v1452_v45, %v654_v41  ;;  %v824_v47 = vpop.f32.mrb[7].mxu0  ;;  %v615_v41 = vadd.s32 120, %v2105_v21 }
 0x2e7   : > { %v2165_v48 = vadd.f32 %v824_v47, %v653_v42  ;;  %v663_v42 = vsel %vm647_vm15, 0.0, %v1871_v32 }
 0x2e8   : > { %v633_v47 = vshra.s32 %v615_v41, 3 }
 0x2e9   : > { %899 = vmax.xlane.f32.xlu1 %v2163_v46  ;;  %897 = vmax.xlane.f32.xlu0 %v2165_v48 }
 0x2ea   : > { %vm650_vm1 = vcmp.eq.s32.totalorder %v633_v47, %v2142_v27 }
 0x2eb   : > { %v666_v52 = vsel %vm650_vm1, 0.0, %v1871_v32 }
 0x2ed   : > { %v1455_v54 = vpop.f32.mrb[8].mxu0 }
 0x2ee   : > { %v2174_v55 = vadd.f32 %v1455_v54, %v656_v51  ;;  %v834_v56 = vpop.f32.mrb[9].mxu0 }
 0x2ef   : > { %v2180_v61 = vadd.f32 %v834_v56, %v655_v57 }
 0x2f0   : > { %903 = vmax.xlane.f32.xlu1 %v2174_v55 }
 0x2f4   : > { %901 = vmax.xlane.f32.xlu1 %v2180_v61 }
 0x2f5   : > { %v1458_v2 = vpop.f32.mrb[10].mxu0 }
 0x2f6   : > { %v2187_v3 = vadd.f32 %v1458_v2, %v658_v62  ;;  %v844_v4 = vpop.f32.mrb[11].mxu0 }
 0x2f7   : > { %v2194_v9 = vadd.f32 %v844_v4, %v657_v5 }
 0x2f8   : > { %907 = vmax.xlane.f32.xlu1 %v2187_v3 }
 0x2fc   : > { %905 = vmax.xlane.f32.xlu1 %v2194_v9 }
 0x2fd   : > { %v1461_v13 = vpop.f32.mrb[12].mxu0 }
 0x2fe   : > { %v2201_v15 = vadd.f32 %v1461_v13, %v660_v10  ;;  %v854_v16 = vpop.f32.mrb[13].mxu0 }
 0x2ff   : > { %v2208_v26 = vadd.f32 %v854_v16, %v659_v17 }
 0x300   : > { %911 = vmax.xlane.f32.xlu1 %v2201_v15 }
 0x304   : > { %909 = vmax.xlane.f32.xlu1 %v2208_v26 }
 0x305   : > { %v1464_v31 = vpop.f32.mrb[14].mxu0 }
 0x306   : > { %v2217_v33 = vadd.f32 %v1464_v31, %v662_v29  ;;  %v864_v34 = vpop.f32.mrb[15].mxu0 }
 0x307   : > { %v2225_v38 = vadd.f32 %v864_v34, %v661_v35 }
 0x308   : > { %915 = vmax.xlane.f32.xlu1 %v2217_v33 }
 0x30c   : > { %913 = vmax.xlane.f32.xlu1 %v2225_v38 }
 0x30d   : > { %v1467_v19 = vpop.f32.mrb[16].mxu0 }
 0x30e   : > { %v2232_v44 = vadd.f32 %v1467_v19, %v664_v39  ;;  %v874_v45 = vpop.f32.mrb[17].mxu0 }
 0x30f   : > { %v2235_v49 = vadd.f32 %v874_v45, %v663_v42 }
 0x310   : > { %919 = vmax.xlane.f32.xlu1 %v2232_v44 }
 0x314   : > { %917 = vmax.xlane.f32.xlu1 %v2235_v49 }
 0x315   : > { %v1470_v51 = vpop.f32.mrb[18].mxu0 }
 0x316   : > { %v884_v53 = vpop.f32.mrb[19].mxu0  ;;  %v2244_v56 = vadd.f32 %v1470_v51, %v666_v52 }
 0x317   : > { %v2242_v54 = vadd.f32 %v884_v53, %v665_v50 }
 0x319   : > { %921 = vmax.xlane.f32.xlu1 %v2242_v54 }
 0x31d   : > { %923 = vmax.xlane.f32.xlu1 %v2244_v56 }
 0x36e   : > { %v894_v57 = vpop.xlane.xlu1 %893 }
 0x36f   : > { %v925_v27 = vsub.f32 %v2150_v37, %v894_v57 }
 0x371   : > { %v941_v63 = vmul.f32 1.442695, %v925_v27 }
 0x372   : > { %v896_v58 = vpop.xlane.xlu1 %895 }
 0x373   : > { %v926_v59 = vsub.f32 %v2157_v40, %v896_v58 }
 0x375   : > { %v943_v60 = vmul.f32 1.442695, %v926_v59 }
 0x376   : > { %v900_v62 = vpop.xlane.xlu1 %899  ;;  %v898_v0 = vpop.xlane.xlu0 %897 }
 0x377   : > { %1638 = vpow2.f32 %v943_v60  ;;  %v928_v32 = vsub.f32 %v2163_v46, %v900_v62  ;;  %v927_v2 = vsub.f32 %v2165_v48, %v898_v0  ;;  %v557_v62 = vpop.f32.mrb[0].mxu1 }
 0x378   : > { %1640 = vpow2.f32 %v941_v63 }
 0x379   : > { %v947_v1 = vmul.f32 1.442695, %v928_v32  ;;  %v945_v5 = vmul.f32 1.442695, %v927_v2  ;;  %v1441_v32 = vpop.f32.mrb[1].mxu1 }
 0x37a   : > { %v560_v0 = vpop.f32.mrb[2].mxu1 }
 0x37b   : > { %1642 = vpow2.f32 %v947_v1  ;;  %v1442_v2 = vpop.f32.mrb[3].mxu1 }
 0x37c   : > { %1644 = vpow2.f32 %v945_v5  ;;  %v1626_v5 = vld [vmem:[#allocation7] sm:$0xff]  }
 0x37d   : > { %v904_v4 = vpop.xlane.xlu1 %903  ;;  %1492 = vmatpush3.bf16.msra.mxu0 %v1626_v5 }
 0x37e   : > { %v930_v6 = vsub.f32 %v2174_v55, %v904_v4  ;;  %1493 = vmatprep.subr.bf16.mxu0 %v1870_v18 }
 0x380   : > { %v951_v40 = vmul.f32 1.442695, %v930_v6  ;;  %v1627_v6 = vld [vmem:[#allocation7 + $0x8] sm:$0xff]  }
 0x381   : > { %v2253_v7 = vpop.eup %1638  ;;  %v902_v37 = vpop.xlane.xlu1 %901  ;;  %1494 = vmatpush3.bf16.msra.mxu0 %v1627_v6 }
 0x382   : > { %975 = vadd.xlane.f32.xlu1 %v2253_v7  ;;  %v929_v8 = vsub.f32 %v2180_v61, %v902_v37  ;;  %v2257_v46 = vpop.eup %1640  ;;  %1646 = vpow2.f32 %v951_v40  ;;  %1495 = vmatprep.subr.bf16.mxu0 %v1870_v18  ;;  %v1630_v37 = vld [vmem:[#allocation7 + $0x20] sm:$0xff]   ;;  %v1631_v40 = vld [vmem:[#allocation7 + $0x28] sm:$0xff]  }
 0x384   : > { %v949_v48 = vmul.f32 1.442695, %v929_v8  ;;  %v1632_v8 = vld [vmem:[#allocation7 + $0x30] sm:$0xff]  }
 0x385   : > { %v908_v10 = vpop.xlane.xlu1 %907  ;;  %v2261_v12 = vpop.eup %1642 }
 0x386   : > { %973 = vadd.xlane.f32.xlu1 %v2257_v46  ;;  %v932_v11 = vsub.f32 %v2187_v3, %v908_v10  ;;  %1648 = vpow2.f32 %v949_v48  ;;  %v2265_v16 = vpop.eup %1644 }
 0x388   : > { %v955_v13 = vmul.f32 1.442695, %v932_v11 }
 0x389   : > { %v906_v55 = vpop.xlane.xlu1 %905 }
 0x38a   : > { %979 = vadd.xlane.f32.xlu1 %v2261_v12  ;;  %v931_v14 = vsub.f32 %v2194_v9, %v906_v55  ;;  %1650 = vpow2.f32 %v955_v13 }
 0x38c   : > { %v953_v17 = vmul.f32 1.442695, %v931_v14  ;;  %v2269_v24 = vpop.eup %1646 }
 0x38d   : > { %v912_v61 = vpop.xlane.xlu1 %911 }
 0x38e   : > { %977 = vadd.xlane.f32.xlu1 %v2265_v16  ;;  %v934_v22 = vsub.f32 %v2201_v15, %v912_v61  ;;  %1652 = vpow2.f32 %v953_v17 }
 0x390   : > { %v959_v25 = vmul.f32 1.442695, %v934_v22  ;;  %v2273_v29 = vpop.eup %1648 }
 0x391   : > { %v910_v3 = vpop.xlane.xlu1 %909 }
 0x392   : > { %983 = vadd.xlane.f32.xlu1 %v2269_v24  ;;  %v933_v28 = vsub.f32 %v2208_v26, %v910_v3  ;;  %1654 = vpow2.f32 %v959_v25 }
 0x394   : > { %v957_v30 = vmul.f32 1.442695, %v933_v28  ;;  %v2276_v31 = vpop.eup %1650 }
 0x395   : > { %v916_v9 = vpop.xlane.xlu1 %915 }
 0x396   : > { %981 = vadd.xlane.f32.xlu1 %v2273_v29  ;;  %1656 = vpow2.f32 %v957_v30  ;;  %v936_v20 = vsub.f32 %v2217_v33, %v916_v9 }
 0x398   : > { %v2281_v36 = vpop.eup %1652  ;;  %v963_v41 = vmul.f32 1.442695, %v936_v20 }
 0x399   : > { %v914_v34 = vpop.xlane.xlu1 %913 }
 0x39a   : > { %v935_v15 = vsub.f32 %v2225_v38, %v914_v34  ;;  %987 = vadd.xlane.f32.xlu1 %v2276_v31 }
 0x39c   : > { %v961_v35 = vmul.f32 1.442695, %v935_v15  ;;  %v2285_v42 = vpop.eup %1654 }
 0x39d   : > { %v920_v26 = vpop.xlane.xlu1 %919 }
 0x39e   : > { %1658 = vpow2.f32 %v961_v35  ;;  %v938_v39 = vsub.f32 %v2232_v44, %v920_v26  ;;  %985 = vadd.xlane.f32.xlu1 %v2281_v36 }
 0x3a0   : > { %v967_v19 = vmul.f32 1.442695, %v938_v39  ;;  %v2289_v45 = vpop.eup %1656 }
 0x3a1   : > { %v918_v43 = vpop.xlane.xlu1 %917 }
 0x3a2   : > { %1660 = vpow2.f32 %v967_v19  ;;  %v937_v38 = vsub.f32 %v2235_v49, %v918_v43  ;;  %991 = vadd.xlane.f32.xlu1 %v2285_v42 }
 0x3a3   : > { %1662 = vpow2.f32 %v963_v41 }
 0x3a4   : > { %v965_v33 = vmul.f32 1.442695, %v937_v38 }
 0x3a6   : > { %1664 = vpow2.f32 %v965_v33  ;;  %v922_v47 = vpop.xlane.xlu1 %921  ;;  %989 = vadd.xlane.f32.xlu1 %v2289_v45 }
 0x3a7   : > { %v939_v44 = vsub.f32 %v2242_v54, %v922_v47 }
 0x3a8   : > { %v2293_v50 = vpop.eup %1658 }
 0x3a9   : > { %v969_v51 = vmul.f32 1.442695, %v939_v44 }
 0x3aa   : > { %v924_v52 = vpop.xlane.xlu1 %923  ;;  %993 = vadd.xlane.f32.xlu1 %v2293_v50 }
 0x3ab   : > { %1666 = vpow2.f32 %v969_v51  ;;  %v940_v49 = vsub.f32 %v2244_v56, %v924_v52  ;;  %v347_v56 = vsub.s32 2, %v2105_v21  ;;  %v1628_v21 = vld [vmem:[#allocation7 + $0x10] sm:$0xff]  }
 0x3ac   : > { %v2297_v53 = vpop.eup %1660  ;;  %1496 = vmatpush3.bf16.msra.mxu0 %v1628_v21 }
 0x3ad   : > { %v2299_v57 = vpop.eup %1662  ;;  %v971_v58 = vmul.f32 1.442695, %v940_v49  ;;  %999 = vadd.xlane.f32.xlu0 %v2297_v53  ;;  %v348_v60 = vrot.slane %v2111_v23, %v347_v56  ;;  %v1629_v23 = vld [vmem:[#allocation7 + $0x18] sm:$0xff]   ;;  %1497 = vmatprep.subr.bf16.mxu0 %v1870_v18 }
 0x3ae   : > { %995 = vadd.xlane.f32.xlu1 %v2299_v57 }
 0x3af   : > { %1668 = vpow2.f32 %v971_v58  ;;  %v2314_v63 = vadd.f32 %v557_v62, %v348_v60  ;;  %v2316_v1 = vadd.f32 %v560_v0, %v348_v60 }
 0x3b0   : > { %v2303_v54 = vpop.eup %1664  ;;  %1498 = vmatpush3.bf16.msra.mxu0 %v1629_v23 }
 0x3b1   : > { %v1037_v4 = vpack.c.bf16 %v2316_v1, %v2314_v63  ;;  %1499 = vmatprep.subr.bf16.mxu0 %v1870_v18 }
 0x3b2   : > { %997 = vadd.xlane.f32.xlu1 %v2303_v54 }
 0x3b4   : > { %1500 = vmatpush3.bf16.msra.mxu0 %v1630_v37 }
 0x3b5   : > { %v2306_v27 = vpop.eup %1666  ;;  %1501 = vmatprep.subr.bf16.mxu0 %v1870_v18 }
 0x3b6   : > { %1001 = vadd.xlane.f32.xlu1 %v2306_v27 }
 0x3b8   : > { %1502 = vmatpush3.bf16.msra.mxu0 %v1631_v40 }
 0x3b9   : > { %v2309_v59 = vpop.eup %1668  ;;  %1503 = vmatprep.subr.bf16.mxu0 %v1870_v18 }
 0x3ba   : > { %1003 = vadd.xlane.f32.xlu0 %v2309_v59 }
 0x3bc   : > { %1504 = vmatpush3.bf16.msra.mxu0 %v1632_v8 }
 0x3bd   : > { %1505 = vmatprep.subr.bf16.mxu0 %v1870_v18 }
 0x40f   : > { %v976_v10 = vpop.xlane.xlu1 %975 }
 0x410   : > { %1670 = vrcp.f32 %v976_v10 }
 0x413   : > { %v974_v48 = vpop.xlane.xlu1 %973 }
 0x414   : > { %1672 = vrcp.f32 %v974_v48 }
 0x417   : > { %v980_v11 = vpop.xlane.xlu1 %979 }
 0x418   : > { %1674 = vrcp.f32 %v980_v11 }
 0x41a   : > { %v1671_v13 = vpop.eup %1670 }
 0x41b   : > { %v978_v55 = vpop.xlane.xlu1 %977  ;;  %v1022_v22 = vmul.f32 %v1671_v13, %v2253_v7 }
 0x41c   : > { %1676 = vrcp.f32 %v978_v55 }
 0x41e   : > { %v1673_v14 = vpop.eup %1672 }
 0x41f   : > { %v984_v61 = vpop.xlane.xlu1 %983  ;;  %v1021_v17 = vmul.f32 %v1673_v14, %v2257_v46 }
 0x420   : > { %1678 = vrcp.f32 %v984_v61 }
 0x421   : > { %v1038_v3 = vpack.c.bf16 %v1022_v22, %v1021_v17 }
 0x422   : > { %v1675_v28 = vpop.eup %1674 }
 0x423   : > { %1472 = vmatpush3.bf16.xpose.msra.mxu1 %v1038_v3  ;;  %v982_v25 = vpop.xlane.xlu1 %981  ;;  %v1024_v15 = vmul.f32 %v1675_v28, %v2261_v12 }
 0x424   : > { %1680 = vrcp.f32 %v982_v25  ;;  %1473 = vmatprep.subr.bf16.mxu1 %v1870_v18 }
 0x426   : > { %v1677_v9 = vpop.eup %1676 }
 0x427   : > { %v988_v30 = vpop.xlane.xlu1 %987  ;;  %v1023_v34 = vmul.f32 %v1677_v9, %v2265_v16 }
 0x428   : > { %1682 = vrcp.f32 %v988_v30 }
 0x429   : > { %v1039_v20 = vpack.c.bf16 %v1024_v15, %v1023_v34 }
 0x42a   : > { %v1679_v35 = vpop.eup %1678 }
 0x42b   : > { %1474 = vmatpush3.bf16.xpose.msra.mxu1 %v1039_v20  ;;  %v986_v46 = vpop.xlane.xlu1 %985  ;;  %v1026_v41 = vmul.f32 %v1679_v35, %v2269_v24 }
 0x42c   : > { %1684 = vrcp.f32 %v986_v46  ;;  %1475 = vmatprep.subr.bf16.mxu1 %v1870_v18 }
 0x42e   : > { %v1681_v7 = vpop.eup %1680 }
 0x42f   : > { %v992_v26 = vpop.xlane.xlu1 %991  ;;  %v1025_v39 = vmul.f32 %v1681_v7, %v2273_v29 }
 0x430   : > { %1686 = vrcp.f32 %v992_v26 }
 0x431   : > { %v1040_v19 = vpack.c.bf16 %v1026_v41, %v1025_v39 }
 0x432   : > { %v1683_v43 = vpop.eup %1682 }
 0x433   : > { %1476 = vmatpush3.bf16.xpose.msra.mxu1 %v1040_v19  ;;  %v990_v16 = vpop.xlane.xlu1 %989  ;;  %v1028_v47 = vmul.f32 %v1683_v43, %v2276_v31 }
 0x434   : > { %1688 = vrcp.f32 %v990_v16  ;;  %1477 = vmatprep.subr.bf16.mxu1 %v1870_v18 }
 0x436   : > { %v1685_v12 = vpop.eup %1684 }
 0x437   : > { %v994_v38 = vpop.xlane.xlu1 %993  ;;  %v1027_v33 = vmul.f32 %v1685_v12, %v2281_v36 }
 0x438   : > { %1690 = vrcp.f32 %v994_v38 }
 0x439   : > { %v1041_v44 = vpack.c.bf16 %v1028_v47, %v1027_v33 }
 0x43a   : > { %v1687_v51 = vpop.eup %1686  ;;  %v1000_v52 = vpop.xlane.xlu0 %999 }
 0x43b   : > { %1478 = vmatpush3.bf16.xpose.msra.mxu1 %v1041_v44  ;;  %v996_v29 = vpop.xlane.xlu1 %995  ;;  %v1030_v56 = vmul.f32 %v1687_v51, %v2285_v42 }
 0x43c   : > { %1692 = vrcp.f32 %v996_v29  ;;  %1479 = vmatprep.subr.bf16.mxu1 %v1870_v18 }
 0x43e   : > { %v1689_v24 = vpop.eup %1688 }
 0x43f   : > { %v998_v49 = vpop.xlane.xlu1 %997  ;;  %v1029_v58 = vmul.f32 %v1689_v24, %v2289_v45 }
 0x440   : > { %1694 = vrcp.f32 %v998_v49 }
 0x441   : > { %v1042_v60 = vpack.c.bf16 %v1030_v56, %v1029_v58  ;;  %1696 = vrcp.f32 %v1000_v52 }
 0x442   : > { %v1691_v31 = vpop.eup %1690 }
 0x443   : > { %1480 = vmatpush3.bf16.xpose.msra.mxu1 %v1042_v60  ;;  %v1002_v62 = vpop.xlane.xlu1 %1001  ;;  %v1031_v0 = vmul.f32 %v1691_v31, %v2293_v50 }
 0x444   : > { %1481 = vmatprep.subr.bf16.mxu1 %v1870_v18 }
 0x446   : > { %v1693_v36 = vpop.eup %1692 }
 0x447   : > { %v1004_v32 = vpop.xlane.xlu0 %1003  ;;  %v1032_v2 = vmul.f32 %v1693_v36, %v2299_v57 }
 0x448   : > { %1698 = vrcp.f32 %v1004_v32 }
 0x449   : > { %v1043_v5 = vpack.c.bf16 %v1032_v2, %v1031_v0  ;;  %1700 = vrcp.f32 %v1002_v62 }
 0x44a   : > { %v1695_v6 = vpop.eup %1694 }
 0x44b   : > { %1482 = vmatpush3.bf16.xpose.msra.mxu1 %v1043_v5  ;;  %v1697_v42 = vpop.eup %1696  ;;  %v1033_v45 = vmul.f32 %v1695_v6, %v2303_v54  ;;  %v1633_v54 = vld [vmem:[#allocation7 + $0x38] sm:$0xff]  }
 0x44c   : > { %1483 = vmatprep.subr.bf16.mxu1 %v1870_v18  ;;  %v1034_v21 = vmul.f32 %v1697_v42, %v2297_v53  ;;  %1506 = vmatpush3.bf16.msra.mxu0 %v1633_v54 }
 0x44e   : > { %v1044_v23 = vpack.c.bf16 %v1034_v21, %v1033_v45 }
 0x452   : > { %v1699_v37 = vpop.eup %1698 }
 0x453   : > { %1484 = vmatpush3.bf16.xpose.msra.mxu1 %v1044_v23  ;;  %v1701_v40 = vpop.eup %1700  ;;  %v1036_v50 = vmul.f32 %v1699_v37, %v2309_v59 }
 0x454   : > { %1485 = vmatprep.subr.bf16.mxu1 %v1870_v18  ;;  %v1035_v57 = vmul.f32 %v1701_v40, %v2306_v27  ;;  %v1362_v18 = vld [vmem:[%s2412_s4] ss:$0 sm:$0xff] }
 0x456   : > { %v1045_v8 = vpack.c.bf16 %v1036_v50, %v1035_v57 }
 0x45b   : > { %1486 = vmatpush3.bf16.xpose.msra.mxu1 %v1045_v8 }
 0x462   : > { %1488 = vmatmul.mubr.bf16.vlgmr.msra.gmra.mrb[4].mxu1 %v1037_v4 }
 0x535   : > { %v1080_v53 = vpop.f32.mrb[4].mxu1 }
 0x536   : > { %v1489_v10 = vpop.f32.mrb[5].mxu1 }
 0x537   : > { %v1083_v48 = vpop.f32.mrb[6].mxu1 }
 0x538   : > { %v1087_v11 = vpack.c.bf16 %v1083_v48, %v1080_v53  ;;  %v1490_v55 = vpop.f32.mrb[7].mxu1 }
 0x53a   : > { %1508 = vmatmul.mubr.bf16.vlgmr.msra.gmra.mrb[20].mxu0 %v1087_v11 }
 0x60d   : > { %v1193_v27 = vpop.f32.mrb[20].mxu0 }
 0x60e   : > { %v1194_v59 = vadd.f32 %v1362_v18, %v1193_v27  ;;  %v1509_v63 = vpop.f32.mrb[21].mxu0 }
 0x60f   : > { %v1196_v1 = vpop.f32.mrb[22].mxu0 }
 0x610   : > { %1200 = vst [vmem:[%s298_s15] sm:$0xff] %v1194_v59  ;;  %v1197_v4 = vadd.f32 %v1362_v18, %v1196_v1  ;;  %v1510_v13 = vpop.f32.mrb[23].mxu0 }
 0x612   : > { %1201 = vst [vmem:[%s298_s15 + $0x8] sm:$0xff] %v1197_v4 }
 0x613   : > { %1801 = shalt.err (!%p1798_p2)
}
 0x614   : > { %s1802_s16 = scalar_lea.hbm %s2364_s14, 256  ;;  %s1806_s19 = scalar_lea.hbm %s2414_s6, 512 }
 0x615   : > { %p1803_p13 = scmp.ne.s32.totalorder %s2364_s14, %s1802_s16  ;;  %p1807_p4 = scmp.lt.u32.totalorder %s2364_s14, %s2414_s6 }
 0x616   : > { %p1808_p7 = scmp.lt.u32.totalorder %s1806_s19, %s1802_s16  ;;  %p1810_p11 = scmp.lt.u32.totalorder %s1802_s16, %s2364_s14 }
 0x617   : > { %p1804_p6 = pnand %p1803_p13, %p2428_p0 }
 0x618   : > { %p1809_p8 = por %p1808_p7, %p1807_p4 }
 0x619   : > { %p1805_p10 = pneg %p1804_p6 }
 0x61a   : > { %p1811_p1 = por %p1810_p11, %p1809_p8 }
 0x61c   : > { %p1812_p3 = pnand %p1811_p1, %p1805_p10 }
 0x61e   : > { %1815 = shalt.err (!%p1812_p3)
}
 0x61f   : > { %s1874_s20 = smov 128   ;;  %s1875_s9 = smov 8  }
 0x620   : > { %1525 = dma.vmem_to_hbm [thread:$0]  (%p2428_p0), %s2359_s7, 256, %s2364_s14, %s1203_s10, %s1874_s20, %s1874_s20, %s1875_s9  }
 0x621 PF: > { %s1231_s25 = sand.u32 1, %s1846_s21   ;;  %p2429_p5 = scmp.ne.s32.totalorder %s2419_s28, 0 }
 0x622   : > { %p2430_p9 = scmp.ge.s32.totalorder %s1858_s24, 2  ;;  %s1232_s8 = scalar_lea.sflag [#allocation4], %s1231_s25 }
 0x624   : > { %p1539_p12 = pnand %p2430_p9, %p2429_p5 }
 0x626   : > { %1841 = dma.done.wait (!%p1539_p12), %s1232_s8, 256  }
 0x627   : > { %1843 = vsyncadd (!%p1539_p12), %s1232_s8, 4294967040  ;;  %p20_p2 = scmp.ge.s32.totalorder %s2021_s26, 4   ;;  %s2431_s21 = smov %s1850_s22 }
 0x628   : > { %s2432_s22 = smov %s1854_s23  ;;  %s2433_s23 = smov %s2030_s11 }
 0x629   : > { %s2434_s24 = smov %s2021_s26  ;;  %22 = sbr.rel (!%p20_p2) target bundleno = 6 (0x6), region = 97 }
 0x630   :  { %1237 = vsyncpa [#allocation3], 1 }
 0x631   :  { %1239 = vsyncpa [#allocation3 + $0x1], 1 }
 0x632   :  { %1240 = vsyncpa [#allocation6], 1 }
 0x633   :  { %1241 = vsyncpa [#allocation4], 1 }
 0x634   :  { %1243 = vsyncpa [#allocation4 + $0x1], 1 }

// kernel: tpu_custom_call.1
= control target key start
LH: loop header
LB: loop body
LE: loop exit
PB: predicated region body
PF: predicated region fallthrough
CT: control target
= control target key end

     0   :  { %11 = vsyncpa [#allocation3], 0  ;;  %s2408_s0 = inlined_call_operand.hbm [shape: f32[2,16,128], index: 0, kind: input, shape index: {}]   ;;  %s2409_s1 = inlined_call_operand.hbm [shape: bf16[128,384], index: 1, kind: input, shape index: {}]   ;;  %s2410_s2 = inlined_call_operand.vmem [shape: f32[1,384], index: 2, kind: input, shape index: {}]   ;;  %s2411_s3 = inlined_call_operand.hbm [shape: bf16[128,128], index: 3, kind: input, shape index: {}]   ;;  %s2412_s4 = inlined_call_operand.vmem [shape: f32[1,128], index: 4, kind: input, shape index: {}]   ;;  %s2413_s5 = inlined_call_operand.vmem [shape: f32[1,128], index: 5, kind: input, shape index: {}]   ;;  %s2414_s6 = inlined_call_operand.hbm [shape: f32[2,16,128], index: 6, kind: output, shape index: {}]  }
   0x1   :  { %13 = vsyncpa [#allocation3 + $0x1], 0 }
   0x2   :  { %14 = vsyncpa [#allocation6], 0 }
   0x3   :  { %15 = vsyncpa [#allocation4], 0 }
   0x4   :  { %17 = vsyncpa [#allocation4 + $0x1], 0  ;;  %s1911_s21 = smov 0   ;;  %s1913_s22 = smov 0  }
   0x5   :  { %s1915_s23 = smov 0   ;;  %s1917_s24 = smov 0  }
   0x6 LB: > { %s1932_s25 = sadd.s32 4294967295, %s1858_s24   ;;  %s1308_s26 = sadd.s32 4294967294, %s1858_s24   ;;  %s1858_s24 = sphi %s1917_s24, %s2434_s24   ;;  %s1854_s23 = sphi %s1915_s23, %s2433_s23   ;;  %s1850_s22 = sphi %s1913_s22, %s2432_s22   ;;  %s1846_s21 = sphi %s1911_s21, %s2431_s21  }
   0x7   : > { %p43_p0 = scmp.ne.s32.totalorder %s1850_s22, %s1846_s21  ;;  %p2415_p1 = scmp.eq.s32.totalorder %s1932_s25, 0 }
   0x8   : > { %p178_p3 = scmp.eq.s32.totalorder %s1308_s26, 1  ;;  %p1309_p5 = scmp.ge.s32.totalorder %s1858_s24, 1 }
   0x9   : > { %p1941_p4 = por %p2415_p1, %p43_p0  ;;  %p185_p7 = scmp.lt.s32.totalorder %s1858_s24, 3 }
   0xa   : > { %p1946_p6 = por %p178_p3, %p43_p0  ;;  %s1860_s30 = smov [#allocation5]  }
   0xb   : > { %s2418_s27 = scalar_select %p1941_p4, 1, 0 }
   0xc   : > { %s2419_s28 = scalar_select %p1946_p6, 1, 0 }
   0xd   : > { %p1951_p8 = pnand %p1309_p5, %p185_p7  ;;  %s197_s7 = sshll.u32 %s1860_s30, 4  ;;  %s1955_s7 = int_to_ptr.vmem [resolvable:$true] %s197_s7 }
   0xe   : > { %s1861_s9 = smov [#allocation7]   ;;  %s1702_s13 = scalar_lea.hbm %s2409_s1, 3072 }
   0xf   : > { %p1527_p9 = pneg %p1951_p8  ;;  %s213_s10 = sshll.u32 %s1861_s9, 4  ;;  %s1966_s10 = int_to_ptr.vmem [resolvable:$true] %s213_s10 }
  0x10   : > { %p1703_p12 = scmp.ne.s32.totalorder %s2409_s1, %s1702_s13  ;;  %p1709_p5 = scmp.lt.u32.totalorder %s1702_s13, %s2409_s1 }
  0x11   : > { %p1962_p11 = pnand %p1527_p9, %p2415_p1 }
  0x13   : > { %p1704_p13 = pneg %p1962_p11 }
  0x15   : > { %p1705_p0 = pnand %p1704_p13, %p1703_p12 }
  0x17   : > { %p1706_p3 = pneg %p1705_p0 }
  0x19   : > { %p1711_p7 = pnand %p1709_p5, %p1706_p3 }
  0x1b   : > { %1714 = shalt.err (!%p1711_p7)
}
  0x1c   : > { %s1715_s18 = scalar_lea.vmem %s1955_s7, 3072  ;;  %p1723_p2 = scmp.lt.s32.totalorder %s1955_s7, %s1955_s7 }
  0x1d   : > { %p1716_p9 = scmp.ne.s32.totalorder %s1955_s7, %s1715_s18  ;;  %p1724_p12 = scmp.lt.s32.totalorder %s1715_s18, %s1715_s18 }
  0x1f   : > { %p1718_p10 = pnand %p1716_p9, %p1704_p13  ;;  %p1725_p0 = por %p1724_p12, %p1723_p2 }
  0x21   : > { %p1719_p1 = pneg %p1718_p10 }
  0x23   : > { %p1726_p6 = pnand %p1725_p0, %p1719_p1 }
  0x25   : > { %1729 = shalt.err (!%p1726_p6)
}
  0x26   : > { %s1862_s19 = smov 192   ;;  %s1863_s20 = smov 12  }
  0x27   : > { %1530 = dma.hbm_to_vmem [thread:$0]  (!%p1962_p11), %s2409_s1, 3072, %s1955_s7, [#allocation6], %s1862_s19, %s1862_s19, %s1863_s20  }
  0x28   : > { %s1730_s12 = scalar_lea.hbm %s2411_s3, 1024 }
  0x29   : > { %p1731_p2 = scmp.ne.s32.totalorder %s2411_s3, %s1730_s12  ;;  %p1737_p10 = scmp.lt.u32.totalorder %s1730_s12, %s2411_s3 }
  0x2b   : > { %p1733_p1 = pnand %p1731_p2, %p1704_p13 }
  0x2d   : > { %p1734_p6 = pneg %p1733_p1 }
  0x2f   : > { %p1739_p3 = pnand %p1737_p10, %p1734_p6 }
  0x31   : > { %1742 = shalt.err (!%p1739_p3)
}
  0x32   : > { %s1743_s7 = scalar_lea.vmem %s1966_s10, 1024  ;;  %p1751_p12 = scmp.lt.s32.totalorder %s1966_s10, %s1966_s10 }
  0x33   : > { %p1744_p5 = scmp.ne.s32.totalorder %s1966_s10, %s1743_s7  ;;  %p1752_p0 = scmp.lt.s32.totalorder %s1743_s7, %s1743_s7 }
  0x35   : > { %p1746_p7 = pnand %p1744_p5, %p1704_p13  ;;  %p1753_p2 = por %p1752_p0, %p1751_p12 }
  0x37   : > { %p1747_p9 = pneg %p1746_p7 }
  0x39   : > { %p1754_p1 = pnand %p1753_p2, %p1747_p9 }
  0x3b   : > { %1757 = shalt.err (!%p1754_p1)
}
  0x3c   : > { %s1864_s17 = smov 64   ;;  %s1865_s18 = smov 4  }
  0x3d   : > { %1533 = dma.hbm_to_vmem [thread:$0]  (!%p1962_p11), %s2411_s3, 1024, %s1966_s10, [#allocation6], %s1864_s17, %s1864_s17, %s1865_s18  }
  0x3e   : > { %s2021_s26 = sadd.s32 1, %s1858_s24   ;;  %s30_s9 = sadd.s32 1, %s1854_s23 }
  0x3f   : > { %s27_s30 = ssub.s32 %s1858_s24, %s2021_s26  ;;  %p37_p6 = scmp.ne.s32.totalorder %s1854_s23, %s1850_s22 }
  0x40   : > { %p28_p13 = scmp.eq.s32.totalorder %s27_s30, 0  ;;  %p38_p10 = scmp.eq.s32.totalorder %s1858_s24, 0 }
  0x41   : > { %p2422_p5 = scmp.eq.s32.totalorder %s1932_s25, 1  ;;  %p1544_p9 = scmp.lt.s32.totalorder %s1858_s24, 2 }
  0x42   : > { %s2030_s11 = scalar_select %p28_p13, %s1854_s23, %s30_s9  }
  0x43   : > { %p39_p3 = por %p38_p10, %p37_p6  ;;  %p2034_p7 = por %p2422_p5, %p37_p6 }
  0x44   : > { %s233_s8 = sand.u32 1, %s1854_s23   ;;  %s1376_s10 = sshll.u32 %s1858_s24, 8 }
  0x45   : > { %s2423_s12 = scalar_select %p2034_p7, 1, 0 }
  0x46   : > { %s1313_s13 = sshll.u32 %s233_s8, 4  ;;  %s2044_s16 = scalar_lea.hbm %s2408_s0, %s1376_s10 }
  0x47   : > { %s237_s7 = scalar_lea.vmem [#allocation2], %s1313_s13  ;;  %p2048_p11 = pnand %p1544_p9, %p39_p3 }
  0x48   : > { %s244_s17 = sshll.u32 %s237_s7, 4  ;;  %s2052_s19 = scalar_lea.sflag [#allocation3], %s233_s8  ;;  %s2046_s17 = int_to_ptr.vmem [resolvable:$true] %s244_s17 }
  0x49   : > { %s1758_s20 = scalar_lea.hbm %s2044_s16, 256  ;;  %p1760_p0 = pneg %p2048_p11 }
  0x4a   : > { %p1759_p12 = scmp.ne.s32.totalorder %s2044_s16, %s1758_s20  ;;  %s1763_s13 = scalar_lea.hbm %s2408_s0, 512 }
  0x4b   : > { %p1764_p13 = scmp.lt.u32.totalorder %s2044_s16, %s2408_s0  ;;  %p1765_p6 = scmp.lt.u32.totalorder %s1763_s13, %s1758_s20 }
  0x4c   : > { %p1761_p2 = pnand %p1760_p0, %p1759_p12  ;;  %p1767_p3 = scmp.lt.u32.totalorder %s1758_s20, %s2044_s16 }
  0x4d   : > { %p1766_p10 = por %p1765_p6, %p1764_p13 }
  0x4e   : > { %p1762_p1 = pneg %p1761_p2 }
  0x4f   : > { %p1768_p5 = por %p1767_p3, %p1766_p10 }
  0x51   : > { %p1769_p9 = pnand %p1768_p5, %p1762_p1 }
  0x53   : > { %1772 = shalt.err (!%p1769_p9)
}
  0x54   : > { %s1773_s8 = scalar_lea.vmem %s2046_s17, 256  ;;  %s1866_s15 = smov [#allocation2]  }
  0x55   : > { %p1774_p12 = scmp.ne.s32.totalorder %s2046_s17, %s1773_s8  ;;  %s1778_s7 = sshll.u32 %s1866_s15, 4  ;;  %s1779_s7 = int_to_ptr.vmem [resolvable:$false] %s1778_s7 }
  0x56   : > { %s1780_s30 = scalar_lea.vmem %s1779_s7, 512  ;;  %p1781_p4 = scmp.lt.s32.totalorder %s2046_s17, %s1779_s7 }
  0x57   : > { %p1776_p2 = pnand %p1774_p12, %p1760_p0  ;;  %p1782_p13 = scmp.lt.s32.totalorder %s1780_s30, %s1773_s8 }
  0x59   : > { %p1777_p7 = pneg %p1776_p2  ;;  %p1783_p6 = por %p1782_p13, %p1781_p4 }
  0x5b   : > { %p1784_p10 = pnand %p1783_p6, %p1777_p7 }
  0x5d   : > { %1787 = shalt.err (!%p1784_p10)
}
  0x5e   : > { %s1867_s20 = smov 128   ;;  %s1868_s9 = smov 8  }
  0x5f   : > { %1537 = dma.hbm_to_vmem [thread:$0]  (!%p2048_p11), %s2044_s16, 256, %s2046_s17, %s2052_s19, %s1867_s20, %s1867_s20, %s1868_s9  }
  0x60   : > { %256 = sbr.rel (%p1951_p8) target bundleno = 1569 (0x621), region = 44  ;;  %s2083_s13 = sand.u32 (!%p1951_p8), 1, %s1850_s22  }
  0x61   : > { %s1317_s10 = sshll.u32 (!%p1951_p8), %s2083_s13, 4  ;;  %s259_s14 = scalar_lea.sflag (!%p1951_p8), [#allocation3], %s2083_s13 }
  0x62   : > { %s2089_s8 = scalar_lea.vmem (!%p1951_p8), [#allocation2], %s1317_s10  ;;  %p2425_p4 = scmp.ne.s32.totalorder (!%p1951_p8), %s2418_s27, 0 }
  0x67   : > { %1833 = dma.done.wait (%p2425_p4), %s259_s14, 256  }
  0x68   : > { %1835 = vsyncadd (%p2425_p4), %s259_s14, 4294967040  ;;  %p2426_p7 = scmp.eq.s32.totalorder %s1932_s25, 0 }
  0x6a   : > { %1837 = dma.done.wait (%p2426_p7), [#allocation6], 4096   ;;  %p2427_p8 = pmov %p2426_p7 }
  0x6b   : > { %v1869_v0 = vmov 0   ;;  %v1594_v1 = vld [vmem:[#allocation5 + $0x4] ss:$12 sps:$4 sm:$0xff]   ;;  %v1596_v2 = vld [vmem:[#allocation5] ss:$12 sps:$4 sm:$0xff]   ;;  %v337_v20 = vlaneseq  ;;  %vm699_vm0 = vcmask 130048  }
  0x6c   : > { %1839 = vsyncadd (%p2427_p8), [#allocation6], 4294963200  ;;  %512 = vmatprep.mubr.bf16.mxu0 %v1869_v0  ;;  %480 = vmatprep.subr.bf16.mxu0 %v1594_v1  ;;  %v1597_v3 = vld [vmem:[#allocation5 + $0x1c] ss:$12 sps:$4 sm:$0xff]   ;;  %v1599_v4 = vld [vmem:[#allocation5 + $0x18] ss:$12 sps:$4 sm:$0xff]  }
  0x6d   : > { %481 = vmatpush1.bf16.msra.mxu0 %v1596_v2  ;;  %v1600_v5 = vld [vmem:[#allocation5 + $0x34] ss:$12 sps:$4 sm:$0xff]   ;;  %v1602_v6 = vld [vmem:[#allocation5 + $0x30] ss:$12 sps:$4 sm:$0xff]   ;;  %v1603_v7 = vld [vmem:[#allocation5 + $0x4c] ss:$12 sps:$4 sm:$0xff]  }
  0x6e   : > { %482 = vmatprep.subr.bf16.mxu0 %v1597_v3  ;;  %v1605_v8 = vld [vmem:[#allocation5 + $0x48] ss:$12 sps:$4 sm:$0xff]   ;;  %v1606_v9 = vld [vmem:[#allocation5 + $0x64] ss:$12 sps:$4 sm:$0xff]   ;;  %v1608_v10 = vld [vmem:[#allocation5 + $0x60] ss:$12 sps:$4 sm:$0xff]  }
  0x6f   : > { %v1609_v11 = vld [vmem:[#allocation5 + $0x7c] ss:$12 sps:$4 sm:$0xff]   ;;  %v1611_v12 = vld [vmem:[#allocation5 + $0x78] ss:$12 sps:$4 sm:$0xff]   ;;  %v1612_v13 = vld [vmem:[#allocation5 + $0x94] ss:$12 sps:$4 sm:$0xff]  }
  0x70   : > { %v1614_v14 = vld [vmem:[#allocation5 + $0x90] ss:$12 sps:$4 sm:$0xff]   ;;  %v1615_v15 = vld [vmem:[#allocation5 + $0xac] ss:$12 sps:$4 sm:$0xff]   ;;  %v1617_v16 = vld [vmem:[#allocation5 + $0xa8] ss:$12 sps:$4 sm:$0xff]  }
  0x71   : > { %483 = vmatpush1.bf16.msra.mxu0 %v1599_v4  ;;  %v300_v17 = vld [vmem:[%s2089_s8] sm:$0xff]  ;;  %v301_v18 = vld [vmem:[%s2089_s8 + $0x8] sm:$0xff]  ;;  %v2105_v21 = vshrl.u32 %v337_v20, 7  ;;  %vm1872_vm13 = vmmov 0   ;;  %s298_s15 = scalar_lea.vmem [#allocation8], %s1317_s10  ;;  %s1377_s30 = sshll.u32 %s1932_s25, 8 }
  0x72   : > { %484 = vmatprep.subr.bf16.mxu0 %v1600_v5  ;;  %v2101_v19 = vpack.c.bf16 %v301_v18, %v300_v17  ;;  %v2111_v23 = vld [vmem:[%s2410_s2] sm:$0x7]  ;;  %v1618_v17 = vld [vmem:[#allocation5 + $0x8] ss:$12 sps:$4 sm:$0xff]   ;;  %v1870_v18 = vmov 0.0   ;;  %s1216_s7 = sshll.u32 %s298_s15, 4  ;;  %s2364_s14 = scalar_lea.hbm %s2414_s6, %s1377_s30  ;;  %s2359_s7 = int_to_ptr.vmem [resolvable:$true] %s1216_s7 }
  0x73   : > { %v339_v22 = vsub.s32 0, %v2105_v21  ;;  %v343_v24 = vsub.s32 1, %v2105_v21  ;;  %v1345_v56 = vld [vmem:[%s2413_s5] ss:$0 sm:$0xff]  ;;  %1423 = vmatprep.subr.bf16.mxu1 %v1870_v18  ;;  %1439 = vmatprep.mubr.msk.bf16.mxu1 %vm1872_vm13, %v1870_v18  ;;  %s1203_s10 = scalar_lea.sflag [#allocation4], %s2083_s13  ;;  %s1788_s25 = scalar_lea.vmem %s2359_s7, 256 }
  0x74   : > { %1424 = vmatpush3.bf16.msra.mxu1 %v1618_v17  ;;  %p1789_p11 = scmp.ne.s32.totalorder %s2359_s7, %s1788_s25  ;;  %p2428_p0 = scmp.ne.s32.totalorder %s2423_s12, 0 }
  0x75   : > { %485 = vmatpush1.bf16.msra.mxu0 %v1602_v6  ;;  %v340_v25 = vrot.slane %v2111_v23, %v339_v22  ;;  %v344_v26 = vrot.slane %v2111_v23, %v343_v24  ;;  %v1619_v22 = vld [vmem:[#allocation5 + $0x20] ss:$12 sps:$4 sm:$0xff]   ;;  %1425 = vmatprep.subr.bf16.mxu1 %v1870_v18  ;;  %v1620_v24 = vld [vmem:[#allocation5 + $0x38] ss:$12 sps:$4 sm:$0xff]   ;;  %s1873_s8 = smov [#allocation8]  }
  0x76   : > { %486 = vmatprep.subr.bf16.mxu0 %v1603_v7  ;;  %p1790_p1 = pnand %p1789_p11, %p2428_p0  ;;  %s1792_s27 = sshll.u32 %s1873_s8, 4  ;;  %s1793_s27 = int_to_ptr.vmem [resolvable:$false] %s1792_s27 }
  0x77   : > { %s1794_s29 = scalar_lea.vmem %s1793_s27, 512  ;;  %p1795_p5 = scmp.lt.s32.totalorder %s2359_s7, %s1793_s27 }
  0x78   : > { %1426 = vmatpush3.bf16.msra.mxu1 %v1619_v22  ;;  %p1791_p3 = pneg %p1790_p1  ;;  %p1796_p9 = scmp.lt.s32.totalorder %s1794_s29, %s1788_s25 }
  0x79   : > { %487 = vmatpush1.bf16.msra.mxu0 %v1605_v8  ;;  %1427 = vmatprep.subr.bf16.mxu1 %v1870_v18 }
  0x7a   : > { %488 = vmatprep.subr.bf16.mxu0 %v1606_v9  ;;  %p1797_p12 = por %p1796_p9, %p1795_p5 }
  0x7c   : > { %1428 = vmatpush3.bf16.msra.mxu1 %v1620_v24  ;;  %v613_v24 = vadd.s32 104, %v2105_v21  ;;  %p1798_p2 = pnand %p1797_p12, %p1791_p3 }
  0x7d   : > { %489 = vmatpush1.bf16.msra.mxu0 %v1608_v10  ;;  %1429 = vmatprep.subr.bf16.mxu1 %v1870_v18 }
  0x7e   : > { %490 = vmatprep.subr.bf16.mxu0 %v1609_v11 }
  0x81   : > { %491 = vmatpush1.bf16.msra.mxu0 %v1611_v12 }
  0x82   : > { %492 = vmatprep.subr.bf16.mxu0 %v1612_v13 }
  0x85   : > { %493 = vmatpush1.bf16.msra.mxu0 %v1614_v14 }
  0x86   : > { %494 = vmatprep.subr.bf16.mxu0 %v1615_v15 }
  0x89   : > { %495 = vmatpush1.bf16.msra.mxu0 %v1617_v16 }
  0x8c   : > { %513 = vmatmul.mubr.bf16.vlgmr.msra.gmra.mrb[0].mxu0 %v2101_v19 }
 0x15f   : > { %v514_v27 = vpop.f32.mrb[0].mxu0 }
 0x160   : > { %v515_v28 = vadd.f32 %v514_v27, %v340_v25  ;;  %v516_v29 = vpop.f32.mrb[1].mxu0 }
 0x161   : > { %v517_v30 = vadd.f32 %v516_v29, %v344_v26  ;;  %v518_v31 = vpop.f32.mrb[2].mxu0  ;;  %v603_v29 = vadd.s32 24, %v2105_v21 }
 0x162   : > { %v519_v32 = vadd.f32 %v518_v31, %v340_v25  ;;  %v520_v33 = vpop.f32.mrb[3].mxu0  ;;  %v564_v35 = vmul.f32 %v515_v28, %v515_v28  ;;  %v617_v25 = vand.u32 127, %v337_v20  ;;  %v602_v31 = vadd.s32 16, %v2105_v21 }
 0x163   : > { %v521_v34 = vadd.f32 %v520_v33, %v344_v26  ;;  %v577_v37 = vmul.f32 %v517_v30, %v517_v30  ;;  %v601_v26 = vadd.s32 8, %v2105_v21 }
 0x164   : > { %v565_v36 = vmul.f32 %v519_v32, %v519_v32  ;;  %v2142_v27 = vshra.s32 %v617_v25, 3  ;;  %v1625_v25 = vld [vmem:[#allocation5 + $0xb0] ss:$12 sps:$4 sm:$0xff]  }
 0x165   : > { %v578_v38 = vmul.f32 %v521_v34, %v521_v34 }
 0x166   : > { %v566_v39 = vadd.f32 %v565_v36, %v564_v35  ;;  %v620_v35 = vshra.s32 %v602_v31, 3 }
 0x167   : > { %v579_v40 = vadd.f32 %v578_v38, %v577_v37 }
 0x168   : > { %v567_v41 = vrot.slane %v566_v39, 4  ;;  %vm637_vm4 = vcmp.eq.s32.totalorder %v620_v35, %v2142_v27 }
 0x169   : > { %v580_v42 = vrot.slane %v579_v40, 4 }
 0x16a   : > { %v568_v43 = vadd.f32 %v567_v41, %v566_v39  ;;  %v605_v39 = vadd.s32 40, %v2105_v21 }
 0x16b   : > { %v581_v44 = vadd.f32 %v580_v42, %v579_v40 }
 0x16c   : > { %v569_v45 = vrot.slane %v568_v43, 2 }
 0x16d   : > { %v582_v46 = vrot.slane %v581_v44, 2 }
 0x16e   : > { %v570_v47 = vadd.f32 %v569_v45, %v568_v43  ;;  %v623_v43 = vshra.s32 %v605_v39, 3 }
 0x16f   : > { %v583_v48 = vadd.f32 %v582_v46, %v581_v44  ;;  %v604_v44 = vadd.s32 32, %v2105_v21 }
 0x170   : > { %v571_v49 = vrot.slane %v570_v47, 1  ;;  %vm640_vm5 = vcmp.eq.s32.totalorder %v623_v43, %v2142_v27 }
 0x171   : > { %v584_v50 = vrot.slane %v583_v48, 1 }
 0x172   : > { %v572_v51 = vadd.f32 %v571_v49, %v570_v47  ;;  %v622_v49 = vshra.s32 %v604_v44, 3 }
 0x173   : > { %v585_v52 = vadd.f32 %v584_v50, %v583_v48  ;;  %v607_v50 = vadd.s32 56, %v2105_v21 }
 0x174   : > { %v573_v53 = vmax.f32 %v572_v51, 1e-24  ;;  %vm639_vm6 = vcmp.eq.s32.totalorder %v622_v49, %v2142_v27 }
 0x175   : > { %v586_v54 = vmax.f32 %v585_v52, 1e-24  ;;  %v625_v52 = vshra.s32 %v607_v50, 3 }
 0x176   : > { %1634 = vrsqrt.f32 %v573_v53  ;;  %v606_v53 = vadd.s32 48, %v2105_v21 }
 0x177   : > { %1636 = vrsqrt.f32 %v586_v54  ;;  %vm642_vm7 = vcmp.eq.s32.totalorder %v625_v52, %v2142_v27 }
 0x180   : > { %v1635_v55 = vpop.eup %1634 }
 0x181   : > { %v1637_v57 = vpop.eup %1636  ;;  %v576_v58 = vmul.f32 %v1635_v55, %v519_v32  ;;  %v575_v59 = vmul.f32 %v1635_v55, %v515_v28  ;;  %v618_v28 = vshra.s32 %v2105_v21, 3  ;;  %v1871_v32 = vmov -1e+30  }
 0x182   : > { %v589_v60 = vmul.f32 %v1637_v57, %v521_v34  ;;  %v588_v61 = vmul.f32 %v1637_v57, %v517_v30  ;;  %v619_v30 = vshra.s32 %v601_v26, 3  ;;  %v621_v34 = vshra.s32 %v603_v29, 3 }
 0x183   : > { %v597_v62 = vmul.f32 %v1345_v56, %v575_v59  ;;  %v598_v0 = vmul.f32 %v1345_v56, %v576_v58  ;;  %vm635_vm1 = vcmp.eq.s32.totalorder %v618_v28, %v2142_v27  ;;  %v653_v42 = vsel %vm637_vm4, 0.0, %v1871_v32 }
 0x184   : > { %v1511_v63 = vpack.c.bf16 %v589_v60, %v588_v61  ;;  %v651_v33 = vsel %vm635_vm1, 0.0, %v1871_v32  ;;  %vm636_vm2 = vcmp.eq.s32.totalorder %v619_v30, %v2142_v27  ;;  %vm638_vm3 = vcmp.eq.s32.totalorder %v621_v34, %v2142_v27  ;;  %v1621_v60 = vld [vmem:[#allocation5 + $0x50] ss:$12 sps:$4 sm:$0xff]  }
 0x185   : > { %667 = vxpose.xlu0.b32.start [1/2] (short) %v597_v62, 128  ;;  %v652_v38 = vsel %vm636_vm2, 0.0, %v1871_v32  ;;  %v654_v41 = vsel %vm638_vm3, 0.0, %v1871_v32  ;;  %v656_v51 = vsel %vm640_vm5, 0.0, %v1871_v32  ;;  %v655_v57 = vsel %vm639_vm6, 0.0, %v1871_v32  ;;  %1430 = vmatpush3.bf16.msra.mxu1 %v1621_v60 }
 0x186   : > { %1512 = vmatprep.subr.bf16.mxu0 %v1511_v63  ;;  %v624_v58 = vshra.s32 %v606_v53, 3  ;;  %v609_v59 = vadd.s32 72, %v2105_v21  ;;  %v658_v62 = vsel %vm642_vm7, 0.0, %v1871_v32  ;;  %1431 = vmatprep.subr.bf16.mxu1 %v1870_v18  ;;  %v612_v28 = vadd.s32 96, %v2105_v21 }
 0x187   : > { %1514 = vmatpush3.bf16.msra.mxu0 %v1511_v63  ;;  %v631_v30 = vshra.s32 %v613_v24, 3 }
 0x188   : > { %1491 = vmatprep.subr.bf16.mxu0 %v1870_v18  ;;  %vm641_vm8 = vcmp.eq.s32.totalorder %v624_v58, %v2142_v27  ;;  %v627_v63 = vshra.s32 %v609_v59, 3 }
 0x189   : > { %668 = vxpose.xlu0.b32.end [2/2] (short) %v598_v0, 128  ;;  %v608_v0 = vadd.s32 64, %v2105_v21  ;;  %vm648_vm14 = vcmp.eq.s32.totalorder %v631_v30, %v2142_v27 }
 0x18a   : > { %vm644_vm9 = vcmp.eq.s32.totalorder %v627_v63, %v2142_v27  ;;  %v664_v39 = vsel %vm648_vm14, 0.0, %v1871_v32 }
 0x205   : > { %v683_v1 = vpop.trf.xlu0 }
 0x206   : > { %1447 = vmatprep.mubr.msk.f32.mxu0 %vm699_vm0, %v683_v1  ;;  %v1622_v1 = vld [vmem:[#allocation5 + $0x68] ss:$12 sps:$4 sm:$0xff]  }
 0x207   : > { %1432 = vmatpush3.bf16.msra.mxu1 %v1622_v1 }
 0x208   : > { %1433 = vmatprep.subr.bf16.mxu1 %v1870_v18 }
 0x209   : > { %v684_v2 = vpop.trf.xlu0 }
 0x20a   : > { %1448 = vmatmul.mubr.msk.f32.vlgmr.msra.gmra.mrb[4].mxu0 %vm699_vm0, %v684_v2 }
 0x20d   : > { %v685_v3 = vpop.trf.xlu0 }
 0x20e   : > { %1450 = vmatprep.mubr.msk.f32.mxu0 %vm699_vm0, %v685_v3 }
 0x211   : > { %v686_v4 = vpop.trf.xlu0 }
 0x212   : > { %1451 = vmatmul.mubr.msk.f32.gmra.mrb[6].mxu0 %vm699_vm0, %v686_v4 }
 0x215   : > { %v687_v5 = vpop.trf.xlu0 }
 0x216   : > { %1453 = vmatprep.mubr.msk.f32.mxu0 %vm699_vm0, %v687_v5  ;;  %v657_v5 = vsel %vm641_vm8, 0.0, %v1871_v32 }
 0x219   : > { %v688_v6 = vpop.trf.xlu0 }
 0x21a   : > { %1454 = vmatmul.mubr.msk.f32.gmra.mrb[8].mxu0 %vm699_vm0, %v688_v6  ;;  %v626_v6 = vshra.s32 %v608_v0, 3 }
 0x21c   : > { %vm643_vm10 = vcmp.eq.s32.totalorder %v626_v6, %v2142_v27 }
 0x21d   : > { %v689_v7 = vpop.trf.xlu0  ;;  %v659_v17 = vsel %vm643_vm10, 0.0, %v1871_v32 }
 0x21e   : > { %1456 = vmatprep.mubr.msk.f32.mxu0 %vm699_vm0, %v689_v7  ;;  %v611_v7 = vadd.s32 88, %v2105_v21 }
 0x221   : > { %v690_v8 = vpop.trf.xlu0 }
 0x222   : > { %1457 = vmatmul.mubr.msk.f32.gmra.mrb[10].mxu0 %vm699_vm0, %v690_v8  ;;  %v1623_v8 = vld [vmem:[#allocation5 + $0x80] ss:$12 sps:$4 sm:$0xff]  }
 0x223   : > { %1434 = vmatpush3.bf16.msra.mxu1 %v1623_v8 }
 0x224   : > { %1435 = vmatprep.subr.bf16.mxu1 %v1870_v18 }
 0x225   : > { %v691_v9 = vpop.trf.xlu0 }
 0x226   : > { %1459 = vmatprep.mubr.msk.f32.mxu0 %vm699_vm0, %v691_v9 }
 0x229   : > { %v692_v10 = vpop.trf.xlu0 }
 0x22a   : > { %1460 = vmatmul.mubr.msk.f32.gmra.mrb[12].mxu0 %vm699_vm0, %v692_v10  ;;  %v660_v10 = vsel %vm644_vm9, 0.0, %v1871_v32 }
 0x22d   : > { %v693_v11 = vpop.trf.xlu0 }
 0x22e   : > { %1462 = vmatprep.mubr.msk.f32.mxu0 %vm699_vm0, %v693_v11  ;;  %v629_v11 = vshra.s32 %v611_v7, 3 }
 0x230   : > { %vm646_vm11 = vcmp.eq.s32.totalorder %v629_v11, %v2142_v27 }
 0x231   : > { %v694_v12 = vpop.trf.xlu0  ;;  %v662_v29 = vsel %vm646_vm11, 0.0, %v1871_v32 }
 0x232   : > { %1463 = vmatmul.mubr.msk.f32.gmra.mrb[14].mxu0 %vm699_vm0, %v694_v12  ;;  %v610_v12 = vadd.s32 80, %v2105_v21 }
 0x234   : > { %v628_v22 = vshra.s32 %v610_v12, 3 }
 0x235   : > { %v695_v13 = vpop.trf.xlu0 }
 0x236   : > { %1465 = vmatprep.mubr.msk.f32.mxu0 %vm699_vm0, %v695_v13  ;;  %vm645_vm12 = vcmp.eq.s32.totalorder %v628_v22, %v2142_v27 }
 0x237   : > { %v661_v35 = vsel %vm645_vm12, 0.0, %v1871_v32 }
 0x239   : > { %v696_v14 = vpop.trf.xlu0 }
 0x23a   : > { %1466 = vmatmul.mubr.msk.f32.gmra.mrb[16].mxu0 %vm699_vm0, %v696_v14  ;;  %v1624_v14 = vld [vmem:[#allocation5 + $0x98] ss:$12 sps:$4 sm:$0xff]  }
 0x23b   : > { %1436 = vmatpush3.bf16.msra.mxu1 %v1624_v14 }
 0x23c   : > { %1437 = vmatprep.subr.bf16.mxu1 %v1870_v18 }
 0x23d   : > { %v697_v15 = vpop.trf.xlu0 }
 0x23e   : > { %1468 = vmatprep.mubr.msk.f32.mxu0 %vm699_vm0, %v697_v15 }
 0x23f   : > { %1438 = vmatpush3.bf16.msra.mxu1 %v1625_v25 }
 0x240   : > { %1471 = vmatprep.subr.bf16.mxu1 %v1870_v18 }
 0x241   : > { %v698_v16 = vpop.trf.xlu0 }
 0x242   : > { %1469 = vmatmul.mubr.msk.f32.gmra.mrb[18].mxu0 %vm699_vm0, %v698_v16  ;;  %1440 = vmatmul.mubr.bf16.vlgmr.msra.gmra.mrb[0].mxu1 %v2101_v19 }
 0x243   : > { %1507 = vmatprep.mubr.msk.bf16.mxu0 %vm1872_vm13, %v1870_v18  ;;  %1487 = vmatprep.mubr.msk.bf16.mxu1 %vm1872_vm13, %v1870_v18 }
 0x2dd   : > { %v1449_v20 = vpop.f32.mrb[4].mxu0 }
 0x2de   : > { %v814_v36 = vpop.f32.mrb[5].mxu0  ;;  %v2157_v40 = vadd.f32 %v1449_v20, %v652_v38  ;;  %v630_v20 = vshra.s32 %v612_v28, 3 }
 0x2df   : > { %v2150_v37 = vadd.f32 %v814_v36, %v651_v33  ;;  %v614_v36 = vadd.s32 112, %v2105_v21 }
 0x2e0   : > { %vm647_vm15 = vcmp.eq.s32.totalorder %v630_v20, %v2142_v27 }
 0x2e1   : > { %893 = vmax.xlane.f32.xlu1 %v2150_v37  ;;  %v632_v43 = vshra.s32 %v614_v36, 3 }
 0x2e3   : > { %vm649_vm0 = vcmp.eq.s32.totalorder %v632_v43, %v2142_v27 }
 0x2e4   : > { %v665_v50 = vsel %vm649_vm0, 0.0, %v1871_v32 }
 0x2e5   : > { %895 = vmax.xlane.f32.xlu1 %v2157_v40  ;;  %v1452_v45 = vpop.f32.mrb[6].mxu0 }
 0x2e6   : > { %v2163_v46 = vadd.f32 %v1452_v45, %v654_v41  ;;  %v824_v47 = vpop.f32.mrb[7].mxu0  ;;  %v615_v41 = vadd.s32 120, %v2105_v21 }
 0x2e7   : > { %v2165_v48 = vadd.f32 %v824_v47, %v653_v42  ;;  %v663_v42 = vsel %vm647_vm15, 0.0, %v1871_v32 }
 0x2e8   : > { %v633_v47 = vshra.s32 %v615_v41, 3 }
 0x2e9   : > { %899 = vmax.xlane.f32.xlu1 %v2163_v46  ;;  %897 = vmax.xlane.f32.xlu0 %v2165_v48 }
 0x2ea   : > { %vm650_vm1 = vcmp.eq.s32.totalorder %v633_v47, %v2142_v27 }
 0x2eb   : > { %v666_v52 = vsel %vm650_vm1, 0.0, %v1871_v32 }
 0x2ed   : > { %v1455_v54 = vpop.f32.mrb[8].mxu0 }
 0x2ee   : > { %v2174_v55 = vadd.f32 %v1455_v54, %v656_v51  ;;  %v834_v56 = vpop.f32.mrb[9].mxu0 }
 0x2ef   : > { %v2180_v61 = vadd.f32 %v834_v56, %v655_v57 }
 0x2f0   : > { %903 = vmax.xlane.f32.xlu1 %v2174_v55 }
 0x2f4   : > { %901 = vmax.xlane.f32.xlu1 %v2180_v61 }
 0x2f5   : > { %v1458_v2 = vpop.f32.mrb[10].mxu0 }
 0x2f6   : > { %v2187_v3 = vadd.f32 %v1458_v2, %v658_v62  ;;  %v844_v4 = vpop.f32.mrb[11].mxu0 }
 0x2f7   : > { %v2194_v9 = vadd.f32 %v844_v4, %v657_v5 }
 0x2f8   : > { %907 = vmax.xlane.f32.xlu1 %v2187_v3 }
 0x2fc   : > { %905 = vmax.xlane.f32.xlu1 %v2194_v9 }
 0x2fd   : > { %v1461_v13 = vpop.f32.mrb[12].mxu0 }
 0x2fe   : > { %v2201_v15 = vadd.f32 %v1461_v13, %v660_v10  ;;  %v854_v16 = vpop.f32.mrb[13].mxu0 }
 0x2ff   : > { %v2208_v26 = vadd.f32 %v854_v16, %v659_v17 }
 0x300   : > { %911 = vmax.xlane.f32.xlu1 %v2201_v15 }
 0x304   : > { %909 = vmax.xlane.f32.xlu1 %v2208_v26 }
 0x305   : > { %v1464_v31 = vpop.f32.mrb[14].mxu0 }
 0x306   : > { %v2217_v33 = vadd.f32 %v1464_v31, %v662_v29  ;;  %v864_v34 = vpop.f32.mrb[15].mxu0 }
 0x307   : > { %v2225_v38 = vadd.f32 %v864_v34, %v661_v35 }
 0x308   : > { %915 = vmax.xlane.f32.xlu1 %v2217_v33 }
 0x30c   : > { %913 = vmax.xlane.f32.xlu1 %v2225_v38 }
 0x30d   : > { %v1467_v19 = vpop.f32.mrb[16].mxu0 }
 0x30e   : > { %v2232_v44 = vadd.f32 %v1467_v19, %v664_v39  ;;  %v874_v45 = vpop.f32.mrb[17].mxu0 }
 0x30f   : > { %v2235_v49 = vadd.f32 %v874_v45, %v663_v42 }
 0x310   : > { %919 = vmax.xlane.f32.xlu1 %v2232_v44 }
 0x314   : > { %917 = vmax.xlane.f32.xlu1 %v2235_v49 }
 0x315   : > { %v1470_v51 = vpop.f32.mrb[18].mxu0 }
 0x316   : > { %v884_v53 = vpop.f32.mrb[19].mxu0  ;;  %v2244_v56 = vadd.f32 %v1470_v51, %v666_v52 }
 0x317   : > { %v2242_v54 = vadd.f32 %v884_v53, %v665_v50 }
 0x319   : > { %921 = vmax.xlane.f32.xlu1 %v2242_v54 }
 0x31d   : > { %923 = vmax.xlane.f32.xlu1 %v2244_v56 }
 0x36e   : > { %v894_v57 = vpop.xlane.xlu1 %893 }
 0x36f   : > { %v925_v27 = vsub.f32 %v2150_v37, %v894_v57 }
 0x371   : > { %v941_v63 = vmul.f32 1.442695, %v925_v27 }
 0x372   : > { %v896_v58 = vpop.xlane.xlu1 %895 }
 0x373   : > { %v926_v59 = vsub.f32 %v2157_v40, %v896_v58 }
 0x375   : > { %v943_v60 = vmul.f32 1.442695, %v926_v59 }
 0x376   : > { %v900_v62 = vpop.xlane.xlu1 %899  ;;  %v898_v0 = vpop.xlane.xlu0 %897 }
 0x377   : > { %1638 = vpow2.f32 %v943_v60  ;;  %v928_v32 = vsub.f32 %v2163_v46, %v900_v62  ;;  %v927_v2 = vsub.f32 %v2165_v48, %v898_v0  ;;  %v557_v62 = vpop.f32.mrb[0].mxu1 }
 0x378   : > { %1640 = vpow2.f32 %v941_v63 }
 0x379   : > { %v947_v1 = vmul.f32 1.442695, %v928_v32  ;;  %v945_v5 = vmul.f32 1.442695, %v927_v2  ;;  %v1441_v32 = vpop.f32.mrb[1].mxu1 }
 0x37a   : > { %v560_v0 = vpop.f32.mrb[2].mxu1 }
 0x37b   : > { %1642 = vpow2.f32 %v947_v1  ;;  %v1442_v2 = vpop.f32.mrb[3].mxu1 }
 0x37c   : > { %1644 = vpow2.f32 %v945_v5  ;;  %v1626_v5 = vld [vmem:[#allocation7] sm:$0xff]  }
 0x37d   : > { %v904_v4 = vpop.xlane.xlu1 %903  ;;  %1492 = vmatpush3.bf16.msra.mxu0 %v1626_v5 }
 0x37e   : > { %v930_v6 = vsub.f32 %v2174_v55, %v904_v4  ;;  %1493 = vmatprep.subr.bf16.mxu0 %v1870_v18 }
 0x380   : > { %v951_v40 = vmul.f32 1.442695, %v930_v6  ;;  %v1627_v6 = vld [vmem:[#allocation7 + $0x8] sm:$0xff]  }
 0x381   : > { %v2253_v7 = vpop.eup %1638  ;;  %v902_v37 = vpop.xlane.xlu1 %901  ;;  %1494 = vmatpush3.bf16.msra.mxu0 %v1627_v6 }
 0x382   : > { %975 = vadd.xlane.f32.xlu1 %v2253_v7  ;;  %v929_v8 = vsub.f32 %v2180_v61, %v902_v37  ;;  %v2257_v46 = vpop.eup %1640  ;;  %1646 = vpow2.f32 %v951_v40  ;;  %1495 = vmatprep.subr.bf16.mxu0 %v1870_v18  ;;  %v1630_v37 = vld [vmem:[#allocation7 + $0x20] sm:$0xff]   ;;  %v1631_v40 = vld [vmem:[#allocation7 + $0x28] sm:$0xff]  }
 0x384   : > { %v949_v48 = vmul.f32 1.442695, %v929_v8  ;;  %v1632_v8 = vld [vmem:[#allocation7 + $0x30] sm:$0xff]  }
 0x385   : > { %v908_v10 = vpop.xlane.xlu1 %907  ;;  %v2261_v12 = vpop.eup %1642 }
 0x386   : > { %973 = vadd.xlane.f32.xlu1 %v2257_v46  ;;  %v932_v11 = vsub.f32 %v2187_v3, %v908_v10  ;;  %1648 = vpow2.f32 %v949_v48  ;;  %v2265_v16 = vpop.eup %1644 }
 0x388   : > { %v955_v13 = vmul.f32 1.442695, %v932_v11 }
 0x389   : > { %v906_v55 = vpop.xlane.xlu1 %905 }
 0x38a   : > { %979 = vadd.xlane.f32.xlu1 %v2261_v12  ;;  %v931_v14 = vsub.f32 %v2194_v9, %v906_v55  ;;  %1650 = vpow2.f32 %v955_v13 }
 0x38c   : > { %v953_v17 = vmul.f32 1.442695, %v931_v14  ;;  %v2269_v24 = vpop.eup %1646 }
 0x38d   : > { %v912_v61 = vpop.xlane.xlu1 %911 }
 0x38e   : > { %977 = vadd.xlane.f32.xlu1 %v2265_v16  ;;  %v934_v22 = vsub.f32 %v2201_v15, %v912_v61  ;;  %1652 = vpow2.f32 %v953_v17 }
 0x390   : > { %v959_v25 = vmul.f32 1.442695, %v934_v22  ;;  %v2273_v29 = vpop.eup %1648 }
 0x391   : > { %v910_v3 = vpop.xlane.xlu1 %909 }
 0x392   : > { %983 = vadd.xlane.f32.xlu1 %v2269_v24  ;;  %v933_v28 = vsub.f32 %v2208_v26, %v910_v3  ;;  %1654 = vpow2.f32 %v959_v25 }
 0x394   : > { %v957_v30 = vmul.f32 1.442695, %v933_v28  ;;  %v2276_v31 = vpop.eup %1650 }
 0x395   : > { %v916_v9 = vpop.xlane.xlu1 %915 }
 0x396   : > { %981 = vadd.xlane.f32.xlu1 %v2273_v29  ;;  %1656 = vpow2.f32 %v957_v30  ;;  %v936_v20 = vsub.f32 %v2217_v33, %v916_v9 }
 0x398   : > { %v2281_v36 = vpop.eup %1652  ;;  %v963_v41 = vmul.f32 1.442695, %v936_v20 }
 0x399   : > { %v914_v34 = vpop.xlane.xlu1 %913 }
 0x39a   : > { %v935_v15 = vsub.f32 %v2225_v38, %v914_v34  ;;  %987 = vadd.xlane.f32.xlu1 %v2276_v31 }
 0x39c   : > { %v961_v35 = vmul.f32 1.442695, %v935_v15  ;;  %v2285_v42 = vpop.eup %1654 }
 0x39d   : > { %v920_v26 = vpop.xlane.xlu1 %919 }
 0x39e   : > { %1658 = vpow2.f32 %v961_v35  ;;  %v938_v39 = vsub.f32 %v2232_v44, %v920_v26  ;;  %985 = vadd.xlane.f32.xlu1 %v2281_v36 }
 0x3a0   : > { %v967_v19 = vmul.f32 1.442695, %v938_v39  ;;  %v2289_v45 = vpop.eup %1656 }
 0x3a1   : > { %v918_v43 = vpop.xlane.xlu1 %917 }
 0x3a2   : > { %1660 = vpow2.f32 %v967_v19  ;;  %v937_v38 = vsub.f32 %v2235_v49, %v918_v43  ;;  %991 = vadd.xlane.f32.xlu1 %v2285_v42 }
 0x3a3   : > { %1662 = vpow2.f32 %v963_v41 }
 0x3a4   : > { %v965_v33 = vmul.f32 1.442695, %v937_v38 }
 0x3a6   : > { %1664 = vpow2.f32 %v965_v33  ;;  %v922_v47 = vpop.xlane.xlu1 %921  ;;  %989 = vadd.xlane.f32.xlu1 %v2289_v45 }
 0x3a7   : > { %v939_v44 = vsub.f32 %v2242_v54, %v922_v47 }
 0x3a8   : > { %v2293_v50 = vpop.eup %1658 }
 0x3a9   : > { %v969_v51 = vmul.f32 1.442695, %v939_v44 }
 0x3aa   : > { %v924_v52 = vpop.xlane.xlu1 %923  ;;  %993 = vadd.xlane.f32.xlu1 %v2293_v50 }
 0x3ab   : > { %1666 = vpow2.f32 %v969_v51  ;;  %v940_v49 = vsub.f32 %v2244_v56, %v924_v52  ;;  %v347_v56 = vsub.s32 2, %v2105_v21  ;;  %v1628_v21 = vld [vmem:[#allocation7 + $0x10] sm:$0xff]  }
 0x3ac   : > { %v2297_v53 = vpop.eup %1660  ;;  %1496 = vmatpush3.bf16.msra.mxu0 %v1628_v21 }
 0x3ad   : > { %v2299_v57 = vpop.eup %1662  ;;  %v971_v58 = vmul.f32 1.442695, %v940_v49  ;;  %999 = vadd.xlane.f32.xlu0 %v2297_v53  ;;  %v348_v60 = vrot.slane %v2111_v23, %v347_v56  ;;  %v1629_v23 = vld [vmem:[#allocation7 + $0x18] sm:$0xff]   ;;  %1497 = vmatprep.subr.bf16.mxu0 %v1870_v18 }
 0x3ae   : > { %995 = vadd.xlane.f32.xlu1 %v2299_v57 }
 0x3af   : > { %1668 = vpow2.f32 %v971_v58  ;;  %v2314_v63 = vadd.f32 %v557_v62, %v348_v60  ;;  %v2316_v1 = vadd.f32 %v560_v0, %v348_v60 }
 0x3b0   : > { %v2303_v54 = vpop.eup %1664  ;;  %1498 = vmatpush3.bf16.msra.mxu0 %v1629_v23 }
 0x3b1   : > { %v1037_v4 = vpack.c.bf16 %v2316_v1, %v2314_v63  ;;  %1499 = vmatprep.subr.bf16.mxu0 %v1870_v18 }
 0x3b2   : > { %997 = vadd.xlane.f32.xlu1 %v2303_v54 }
 0x3b4   : > { %1500 = vmatpush3.bf16.msra.mxu0 %v1630_v37 }
 0x3b5   : > { %v2306_v27 = vpop.eup %1666  ;;  %1501 = vmatprep.subr.bf16.mxu0 %v1870_v18 }
 0x3b6   : > { %1001 = vadd.xlane.f32.xlu1 %v2306_v27 }
 0x3b8   : > { %1502 = vmatpush3.bf16.msra.mxu0 %v1631_v40 }
 0x3b9   : > { %v2309_v59 = vpop.eup %1668  ;;  %1503 = vmatprep.subr.bf16.mxu0 %v1870_v18 }
 0x3ba   : > { %1003 = vadd.xlane.f32.xlu0 %v2309_v59 }
 0x3bc   : > { %1504 = vmatpush3.bf16.msra.mxu0 %v1632_v8 }
 0x3bd   : > { %1505 = vmatprep.subr.bf16.mxu0 %v1870_v18 }
 0x40f   : > { %v976_v10 = vpop.xlane.xlu1 %975 }
 0x410   : > { %1670 = vrcp.f32 %v976_v10 }
 0x413   : > { %v974_v48 = vpop.xlane.xlu1 %973 }
 0x414   : > { %1672 = vrcp.f32 %v974_v48 }
 0x417   : > { %v980_v11 = vpop.xlane.xlu1 %979 }
 0x418   : > { %1674 = vrcp.f32 %v980_v11 }
 0x41a   : > { %v1671_v13 = vpop.eup %1670 }
 0x41b   : > { %v978_v55 = vpop.xlane.xlu1 %977  ;;  %v1022_v22 = vmul.f32 %v1671_v13, %v2253_v7 }
 0x41c   : > { %1676 = vrcp.f32 %v978_v55 }
 0x41e   : > { %v1673_v14 = vpop.eup %1672 }
 0x41f   : > { %v984_v61 = vpop.xlane.xlu1 %983  ;;  %v1021_v17 = vmul.f32 %v1673_v14, %v2257_v46 }
 0x420   : > { %1678 = vrcp.f32 %v984_v61 }
 0x421   : > { %v1038_v3 = vpack.c.bf16 %v1022_v22, %v1021_v17 }
 0x422   : > { %v1675_v28 = vpop.eup %1674 }
 0x423   : > { %1472 = vmatpush3.bf16.xpose.msra.mxu1 %v1038_v3  ;;  %v982_v25 = vpop.xlane.xlu1 %981  ;;  %v1024_v15 = vmul.f32 %v1675_v28, %v2261_v12 }
 0x424   : > { %1680 = vrcp.f32 %v982_v25  ;;  %1473 = vmatprep.subr.bf16.mxu1 %v1870_v18 }
 0x426   : > { %v1677_v9 = vpop.eup %1676 }
 0x427   : > { %v988_v30 = vpop.xlane.xlu1 %987  ;;  %v1023_v34 = vmul.f32 %v1677_v9, %v2265_v16 }
 0x428   : > { %1682 = vrcp.f32 %v988_v30 }
 0x429   : > { %v1039_v20 = vpack.c.bf16 %v1024_v15, %v1023_v34 }
 0x42a   : > { %v1679_v35 = vpop.eup %1678 }
 0x42b   : > { %1474 = vmatpush3.bf16.xpose.msra.mxu1 %v1039_v20  ;;  %v986_v46 = vpop.xlane.xlu1 %985  ;;  %v1026_v41 = vmul.f32 %v1679_v35, %v2269_v24 }
 0x42c   : > { %1684 = vrcp.f32 %v986_v46  ;;  %1475 = vmatprep.subr.bf16.mxu1 %v1870_v18 }
 0x42e   : > { %v1681_v7 = vpop.eup %1680 }
 0x42f   : > { %v992_v26 = vpop.xlane.xlu1 %991  ;;  %v1025_v39 = vmul.f32 %v1681_v7, %v2273_v29 }
 0x430   : > { %1686 = vrcp.f32 %v992_v26 }
 0x431   : > { %v1040_v19 = vpack.c.bf16 %v1026_v41, %v1025_v39 }
 0x432   : > { %v1683_v43 = vpop.eup %1682 }
 0x433   : > { %1476 = vmatpush3.bf16.xpose.msra.mxu1 %v1040_v19  ;;  %v990_v16 = vpop.xlane.xlu1 %989  ;;  %v1028_v47 = vmul.f32 %v1683_v43, %v2276_v31 }
 0x434   : > { %1688 = vrcp.f32 %v990_v16  ;;  %1477 = vmatprep.subr.bf16.mxu1 %v1870_v18 }
 0x436   : > { %v1685_v12 = vpop.eup %1684 }
 0x437   : > { %v994_v38 = vpop.xlane.xlu1 %993  ;;  %v1027_v33 = vmul.f32 %v1685_v12, %v2281_v36 }
 0x438   : > { %1690 = vrcp.f32 %v994_v38 }
 0x439   : > { %v1041_v44 = vpack.c.bf16 %v1028_v47, %v1027_v33 }
 0x43a   : > { %v1687_v51 = vpop.eup %1686  ;;  %v1000_v52 = vpop.xlane.xlu0 %999 }
 0x43b   : > { %1478 = vmatpush3.bf16.xpose.msra.mxu1 %v1041_v44  ;;  %v996_v29 = vpop.xlane.xlu1 %995  ;;  %v1030_v56 = vmul.f32 %v1687_v51, %v2285_v42 }
 0x43c   : > { %1692 = vrcp.f32 %v996_v29  ;;  %1479 = vmatprep.subr.bf16.mxu1 %v1870_v18 }
 0x43e   : > { %v1689_v24 = vpop.eup %1688 }
 0x43f   : > { %v998_v49 = vpop.xlane.xlu1 %997  ;;  %v1029_v58 = vmul.f32 %v1689_v24, %v2289_v45 }
 0x440   : > { %1694 = vrcp.f32 %v998_v49 }
 0x441   : > { %v1042_v60 = vpack.c.bf16 %v1030_v56, %v1029_v58  ;;  %1696 = vrcp.f32 %v1000_v52 }
 0x442   : > { %v1691_v31 = vpop.eup %1690 }
 0x443   : > { %1480 = vmatpush3.bf16.xpose.msra.mxu1 %v1042_v60  ;;  %v1002_v62 = vpop.xlane.xlu1 %1001  ;;  %v1031_v0 = vmul.f32 %v1691_v31, %v2293_v50 }
 0x444   : > { %1481 = vmatprep.subr.bf16.mxu1 %v1870_v18 }
 0x446   : > { %v1693_v36 = vpop.eup %1692 }
 0x447   : > { %v1004_v32 = vpop.xlane.xlu0 %1003  ;;  %v1032_v2 = vmul.f32 %v1693_v36, %v2299_v57 }
 0x448   : > { %1698 = vrcp.f32 %v1004_v32 }
 0x449   : > { %v1043_v5 = vpack.c.bf16 %v1032_v2, %v1031_v0  ;;  %1700 = vrcp.f32 %v1002_v62 }
 0x44a   : > { %v1695_v6 = vpop.eup %1694 }
 0x44b   : > { %1482 = vmatpush3.bf16.xpose.msra.mxu1 %v1043_v5  ;;  %v1697_v42 = vpop.eup %1696  ;;  %v1033_v45 = vmul.f32 %v1695_v6, %v2303_v54  ;;  %v1633_v54 = vld [vmem:[#allocation7 + $0x38] sm:$0xff]  }
 0x44c   : > { %1483 = vmatprep.subr.bf16.mxu1 %v1870_v18  ;;  %v1034_v21 = vmul.f32 %v1697_v42, %v2297_v53  ;;  %1506 = vmatpush3.bf16.msra.mxu0 %v1633_v54 }
 0x44e   : > { %v1044_v23 = vpack.c.bf16 %v1034_v21, %v1033_v45 }
 0x452   : > { %v1699_v37 = vpop.eup %1698 }
 0x453   : > { %1484 = vmatpush3.bf16.xpose.msra.mxu1 %v1044_v23  ;;  %v1701_v40 = vpop.eup %1700  ;;  %v1036_v50 = vmul.f32 %v1699_v37, %v2309_v59 }
 0x454   : > { %1485 = vmatprep.subr.bf16.mxu1 %v1870_v18  ;;  %v1035_v57 = vmul.f32 %v1701_v40, %v2306_v27  ;;  %v1362_v18 = vld [vmem:[%s2412_s4] ss:$0 sm:$0xff] }
 0x456   : > { %v1045_v8 = vpack.c.bf16 %v1036_v50, %v1035_v57 }
 0x45b   : > { %1486 = vmatpush3.bf16.xpose.msra.mxu1 %v1045_v8 }
 0x462   : > { %1488 = vmatmul.mubr.bf16.vlgmr.msra.gmra.mrb[4].mxu1 %v1037_v4 }
 0x535   : > { %v1080_v53 = vpop.f32.mrb[4].mxu1 }
 0x536   : > { %v1489_v10 = vpop.f32.mrb[5].mxu1 }
 0x537   : > { %v1083_v48 = vpop.f32.mrb[6].mxu1 }
 0x538   : > { %v1087_v11 = vpack.c.bf16 %v1083_v48, %v1080_v53  ;;  %v1490_v55 = vpop.f32.mrb[7].mxu1 }
 0x53a   : > { %1508 = vmatmul.mubr.bf16.vlgmr.msra.gmra.mrb[20].mxu0 %v1087_v11 }
 0x60d   : > { %v1193_v27 = vpop.f32.mrb[20].mxu0 }
 0x60e   : > { %v1194_v59 = vadd.f32 %v1362_v18, %v1193_v27  ;;  %v1509_v63 = vpop.f32.mrb[21].mxu0 }
 0x60f   : > { %v1196_v1 = vpop.f32.mrb[22].mxu0 }
 0x610   : > { %1200 = vst [vmem:[%s298_s15] sm:$0xff] %v1194_v59  ;;  %v1197_v4 = vadd.f32 %v1362_v18, %v1196_v1  ;;  %v1510_v13 = vpop.f32.mrb[23].mxu0 }
 0x612   : > { %1201 = vst [vmem:[%s298_s15 + $0x8] sm:$0xff] %v1197_v4 }
 0x613   : > { %1801 = shalt.err (!%p1798_p2)
}
 0x614   : > { %s1802_s16 = scalar_lea.hbm %s2364_s14, 256  ;;  %s1806_s19 = scalar_lea.hbm %s2414_s6, 512 }
 0x615   : > { %p1803_p13 = scmp.ne.s32.totalorder %s2364_s14, %s1802_s16  ;;  %p1807_p4 = scmp.lt.u32.totalorder %s2364_s14, %s2414_s6 }
 0x616   : > { %p1808_p7 = scmp.lt.u32.totalorder %s1806_s19, %s1802_s16  ;;  %p1810_p11 = scmp.lt.u32.totalorder %s1802_s16, %s2364_s14 }
 0x617   : > { %p1804_p6 = pnand %p1803_p13, %p2428_p0 }
 0x618   : > { %p1809_p8 = por %p1808_p7, %p1807_p4 }
 0x619   : > { %p1805_p10 = pneg %p1804_p6 }
 0x61a   : > { %p1811_p1 = por %p1810_p11, %p1809_p8 }
 0x61c   : > { %p1812_p3 = pnand %p1811_p1, %p1805_p10 }
 0x61e   : > { %1815 = shalt.err (!%p1812_p3)
}
 0x61f   : > { %s1874_s20 = smov 128   ;;  %s1875_s9 = smov 8  }
 0x620   : > { %1525 = dma.vmem_to_hbm [thread:$0]  (%p2428_p0), %s2359_s7, 256, %s2364_s14, %s1203_s10, %s1874_s20, %s1874_s20, %s1875_s9  }
 0x621 PF: > { %s1231_s25 = sand.u32 1, %s1846_s21   ;;  %p2429_p5 = scmp.ne.s32.totalorder %s2419_s28, 0 }
 0x622   : > { %p2430_p9 = scmp.ge.s32.totalorder %s1858_s24, 2  ;;  %s1232_s8 = scalar_lea.sflag [#allocation4], %s1231_s25 }
 0x624   : > { %p1539_p12 = pnand %p2430_p9, %p2429_p5 }
 0x626   : > { %1841 = dma.done.wait (!%p1539_p12), %s1232_s8, 256  }
 0x627   : > { %1843 = vsyncadd (!%p1539_p12), %s1232_s8, 4294967040  ;;  %p20_p2 = scmp.ge.s32.totalorder %s2021_s26, 4   ;;  %s2431_s21 = smov %s1850_s22 }
 0x628   : > { %s2432_s22 = smov %s1854_s23  ;;  %s2433_s23 = smov %s2030_s11 }
 0x629   : > { %s2434_s24 = smov %s2021_s26  ;;  %22 = sbr.rel (!%p20_p2) target bundleno = 6 (0x6), region = 97 }
 0x630   :  { %1237 = vsyncpa [#allocation3], 1 }
 0x631   :  { %1239 = vsyncpa [#allocation3 + $0x1], 1 }
 0x632   :  { %1240 = vsyncpa [#allocation6], 1 }
 0x633   :  { %1241 = vsyncpa [#allocation4], 1 }
 0x634   :  { %1243 = vsyncpa [#allocation4 + $0x1], 1 }

</bundles_post_ra>
